<compile_context>
chip_gen: v7x
topology: tpu7x:2x2x1
jax: 0.10.0
libtpu: 0.0.40
codegen_flags: <defaults>
</compile_context>

<pallas_src>
import jax
import jax.numpy as jnp
from jax import lax
from jax.experimental import pallas as pl
from jax.experimental.pallas import tpu as pltpu

F32 = jnp.float32
BF16 = jnp.bfloat16


def _pick_tile_q(N):
    if N <= 512:
        return N
    for t in (512, 256, 128):
        if N % t == 0:
            return t
    return N  # TODO(synk): ragged N > 512 falls back to an untiled (N, N) attention slab.


def _pick_block_b(B, N):
    if N > 256 or B < 4:
        return 1
    bt = min(8, max(1, B // 2))  # keep >= 2 grid steps (v7x has 2 TensorCores)
    while B % bt:
        bt -= 1
    return bt


def sa_layer(x_ncw, wqk, wv, bv, wt, bt, bn_scale, bn_shift,
             *, block_b=None, tile_q=None, vmem_limit_bytes=None):
    """SA_Layer forward (offset attention).

    x_ncw:  (B, C, N)   -- same layout the PyTorch module receives.
    wqk:    (C//4, C)   shared q/k Conv1d weight (Cout, Cin), bias=False.
    wv, wt: (C, C)      v_conv / trans_conv weights (Cout, Cin).
    bv, bt: (C,)        conv biases.
    bn_scale, bn_shift: (C,)  eval-mode BatchNorm folded to y*scale + shift.
    Returns (B, C, N) float32.
    """
    B, C, N = x_ncw.shape
    CQ = wqk.shape[0]
    CQP = max(128, ((CQ + 127) // 128) * 128)   # lane/MXU-aligned padded q/k width

    BT = _pick_block_b(B, N) if block_b is None else block_b
    assert B % BT == 0, (B, BT)
    TQ = _pick_tile_q(N) if tile_q is None else tile_q
    assert N % TQ == 0, (N, TQ)
    NQ = N // TQ
    NB = B // BT

    x = x_ncw.astype(F32)

    # ---------------- host-side weight preparation ----------------
    # Fold eval-mode BatchNorm into trans_conv (rows = output channels).
    wt_f = (wt * bn_scale[:, None]).astype(BF16)                   # (C, C)
    bt_f = (bt * bn_scale + bn_shift).reshape(C, 1).astype(F32)    # (C, 1)
    # Zero-pad the shared q/k weight and stack it with the v weight so the whole
    # q/k/v projection is one matmul; padded rows contribute 0 to the energy.
    wqk_p = jnp.zeros((CQP, C), wqk.dtype).at[:CQ].set(wqk)
    wcat = jnp.concatenate([wqk_p, wv], axis=0).astype(BF16)       # (CQP + C, C)
    bcat = jnp.concatenate([jnp.zeros((CQP,), F32),
                            bv.astype(F32)]).reshape(CQP + C, 1)   # (CQP + C, 1)

    # ---------------- fused kernel ----------------
    def kernel(x_ref, wcat_ref, bcat_ref, wt_ref, bt_ref, o_ref,
               proj_ref, numer_ref, colsum_ref):
        qi = pl.program_id(1)

        # First query step for this batch block: project q/k/v once into VMEM
        # and zero the offset-attention accumulators.
        @pl.when(qi == 0)
        def _init():
            for bb in range(BT):
                xb = x_ref[bb].astype(BF16)                                # (C, N)
                proj = jnp.dot(wcat_ref[...], xb,
                               preferred_element_type=F32) + bcat_ref[...]
                proj_ref[bb] = proj.astype(BF16)                           # (CQP+C, N)
                numer_ref[bb] = jnp.zeros((C, N), F32)
                colsum_ref[bb] = jnp.zeros((1, N), F32)

        # Row-softmax a (TQ, N) slice of the attention matrix and accumulate the
        # column sums and the xr numerator.
        for bb in range(BT):
            q_all = proj_ref[bb, :CQP, :]                                  # (CQP, N) bf16
            if NQ == 1:
                q_tile = q_all
                xv_tile = proj_ref[bb, CQP:, :]                            # (C, N) bf16
            else:
                qs = pl.multiple_of(qi * TQ, TQ)
                q_tile = proj_ref[bb, :CQP, pl.ds(qs, TQ)]                 # (CQP, TQ)
                xv_tile = proj_ref[bb, CQP:, pl.ds(qs, TQ)]                # (C, TQ)
            # energy[i, j] = <q_i, q_j> for queries i in this tile, all keys j.
            energy = lax.dot_general(q_tile, q_all, (((0,), (0,)), ((), ())),
                                     preferred_element_type=F32)           # (TQ, N)
            m = jnp.max(energy, axis=-1, keepdims=True)
            p = jnp.exp(energy - m)
            attn = p * pl.reciprocal(jnp.sum(p, axis=-1, keepdims=True),
                                     approx=True)                          # (TQ, N)
            colsum_ref[bb] = colsum_ref[bb] + jnp.sum(attn, axis=0, keepdims=True)
            numer_ref[bb] = numer_ref[bb] + jnp.dot(
                xv_tile, attn.astype(BF16), preferred_element_type=F32)    # (C, N)

        # Last query step: column renormalization, trans_conv (BN folded), ReLU,
        # residual; output written directly in the original (C, N) layout.
        @pl.when(qi == NQ - 1)
        def _finalize():
            for bb in range(BT):
                xf = x_ref[bb]                                             # (C, N) f32
                inv_col = 1.0 / (1e-9 + colsum_ref[bb])                    # exact, (1, N)
                xr = numer_ref[bb] * inv_col                               # (C, N)
                y = jnp.dot(wt_ref[...], (xf - xr).astype(BF16),
                            preferred_element_type=F32) + bt_ref[...]
                o_ref[bb] = xf + jnp.maximum(y, 0.0)

    cparams = dict(dimension_semantics=("parallel", "arbitrary"))
    if vmem_limit_bytes is not None:   # raise explicitly on v5e (16 MiB default) for large N
        cparams["vmem_limit_bytes"] = vmem_limit_bytes

    out = pl.pallas_call(
        kernel,
        out_shape=jax.ShapeDtypeStruct((B, C, N), F32),
        grid=(NB, NQ),
        in_specs=[
            pl.BlockSpec((BT, C, N), lambda bi, qi: (bi, 0, 0)),     # x (per batch block)
            pl.BlockSpec((CQP + C, C), lambda bi, qi: (0, 0)),       # stacked q/k + v weight
            pl.BlockSpec((CQP + C, 1), lambda bi, qi: (0, 0)),       # stacked biases
            pl.BlockSpec((C, C), lambda bi, qi: (0, 0)),             # trans weight (BN folded)
            pl.BlockSpec((C, 1), lambda bi, qi: (0, 0)),             # trans bias (BN folded)
        ],
        out_specs=pl.BlockSpec((BT, C, N), lambda bi, qi: (bi, 0, 0)),
        scratch_shapes=[
            pltpu.VMEM((BT, CQP + C, N), BF16),   # q/k/v projections (v bias applied)
            pltpu.VMEM((BT, C, N), F32),          # xr numerator accumulator
            pltpu.VMEM((BT, 1, N), F32),          # attention column-sum accumulator
        ],
        compiler_params=pltpu.CompilerParams(**cparams),
    )(x, wcat, bcat, wt_f, bt_f)
    return out


# ---------------- helpers: BN folding + pure-JAX reference ----------------
def bn_fold(gamma, beta, running_mean, running_var, eps=1e-5):
    s = gamma / jnp.sqrt(running_var + eps)
    return s, beta - running_mean * s


def sa_layer_ref(x, wqk, wv, bv, wt, bt, bn_scale, bn_shift):
    """f32 reference mirroring the PyTorch forward exactly (in (B, C, N))."""
    xq = jnp.einsum("oc,bcn->bno", wqk, x)                 # q_conv(x).permute(0, 2, 1)
    xk = jnp.einsum("oc,bcn->bon", wqk, x)                 # k_conv(x)
    xv = jnp.einsum("oc,bcn->bon", wv, x) + bv[None, :, None]
    energy = jnp.einsum("bno,bom->bnm", xq, xk)
    attn = jax.nn.softmax(energy, axis=-1)
    attn = attn / (1e-9 + jnp.sum(attn, axis=1, keepdims=True))
    xr = jnp.einsum("bcn,bnm->bcm", xv, attn)
    y = jnp.einsum("oc,bcn->bon", wt, x - xr) + bt[None, :, None]
    y = y * bn_scale[None, :, None] + bn_shift[None, :, None]
    return x + jnp.maximum(y, 0.0)


# ---------------- main ----------------
if __name__ == "__main__":
    B, C, N = 2, 256, 128          # 2 point clouds x 128 points, 256 channels

    key = jax.random.PRNGKey(0)
    ks = jax.random.split(key, 10)
    scale = 0.05

    x = 0.5 * jax.random.normal(ks[0], (B, C, N), F32)
    wqk = scale * jax.random.normal(ks[1], (C // 4, C), F32)   # shared q/k weight (Cout, Cin)
    wv = scale * jax.random.normal(ks[2], (C, C), F32)
    bv = scale * jax.random.normal(ks[3], (C,), F32)
    wt = scale * jax.random.normal(ks[4], (C, C), F32)
    bt = scale * jax.random.normal(ks[5], (C,), F32)
    gamma = 1.0 + 0.1 * jax.random.normal(ks[6], (C,), F32)
    beta = 0.1 * jax.random.normal(ks[7], (C,), F32)
    rmean = 0.1 * jax.random.normal(ks[8], (C,), F32)
    rvar = 1.0 + 0.1 * jax.random.uniform(ks[9], (C,), F32)

    bn_s, bn_t = bn_fold(gamma, beta, rmean, rvar)

    out = jax.jit(sa_layer)(x, wqk, wv, bv, wt, bt, bn_s, bn_t)
    out = jax.block_until_ready(out)

    assert out.shape == (B, C, N), out.shape
    assert bool(jnp.all(jnp.isfinite(out)))

    # Correctness vs. f32 reference (tolerance covers bf16 matmul operands and
    # the EUP approximate reciprocal in the row softmax).
    ref = sa_layer_ref(x, wqk, wv, bv, wt, bt, bn_s, bn_t)
    max_err = float(jnp.max(jnp.abs(out - ref)))
    assert max_err < 0.2, max_err

    print("KERNEL_OK")
</pallas_src>

<mosaic_0001>
module attributes {stable_mosaic.version = 11 : i64} {
  func.func @kernel(%arg0: i32, %arg1: i32, %arg2: memref<1x256x128xf32, #tpu.memory_space<vmem>>, %arg3: memref<384x256xbf16, #tpu.memory_space<vmem>>, %arg4: memref<384x1xf32, #tpu.memory_space<vmem>>, %arg5: memref<256x256xbf16, #tpu.memory_space<vmem>>, %arg6: memref<256x1xf32, #tpu.memory_space<vmem>>, %arg7: memref<1x256x128xf32, #tpu.memory_space<vmem>>, %arg8: memref<1x384x128xbf16, #tpu.memory_space<vmem>>, %arg9: memref<1x256x128xf32, #tpu.memory_space<vmem>>, %arg10: memref<1x1x128xf32, #tpu.memory_space<vmem>>) attributes {dimension_semantics = [#tpu.dimension_semantics<parallel>, #tpu.dimension_semantics<arbitrary>], iteration_bounds = array<i64: 2, 1>, scalar_prefetch = 0 : i64, scratch_operands = 3 : i64, tpu.core_type = #tpu.core_type<tc>, window_params = [{transform_indices = @transform_0, window_bounds = array<i64: 1, 256, 128>}, {pipeline_mode = #tpu.pipeline_mode<synchronous>, transform_indices = @transform_1, window_bounds = array<i64: 384, 256>}, {pipeline_mode = #tpu.pipeline_mode<synchronous>, transform_indices = @transform_2, window_bounds = array<i64: 384, 1>}, {pipeline_mode = #tpu.pipeline_mode<synchronous>, transform_indices = @transform_3, window_bounds = array<i64: 256, 256>}, {pipeline_mode = #tpu.pipeline_mode<synchronous>, transform_indices = @transform_4, window_bounds = array<i64: 256, 1>}, {transform_indices = @transform_5, window_bounds = array<i64: 1, 256, 128>}]} {
    %c0_i32 = arith.constant 0 : i32
    %0 = arith.cmpi eq, %arg1, %c0_i32 : i32
    %1 = arith.extui %0 : i1 to i32
    %c0_i32_0 = arith.constant 0 : i32
    %2 = arith.cmpi ne, %1, %c0_i32_0 : i32
    scf.if %2 {
      %c0_23 = arith.constant 0 : index
      %c0_24 = arith.constant 0 : index
      %c0_25 = arith.constant 0 : index
      %37 = vector.load %arg2[%c0_23, %c0_24, %c0_25] : memref<1x256x128xf32, #tpu.memory_space<vmem>>, vector<1x256x128xf32>
      %38 = vector.shape_cast %37 : vector<1x256x128xf32> to vector<256x128xf32>
      %39 = arith.truncf %38 : vector<256x128xf32> to vector<256x128xbf16>
      %c0_26 = arith.constant 0 : index
      %c0_27 = arith.constant 0 : index
      %40 = vector.load %arg3[%c0_26, %c0_27] : memref<384x256xbf16, #tpu.memory_space<vmem>>, vector<384x256xbf16>
      %cst_28 = arith.constant dense<0.000000e+00> : vector<384x128xf32>
      %41 = tpu.matmul %40, %39, %cst_28 {dimension_numbers = #tpu.dot_dimension_numbers<[1], [0], [0], [1], [0, 0, 1, 1], [], []>} : vector<384x256xbf16>, vector<256x128xbf16>, vector<384x128xf32> -> vector<384x128xf32>
      %c0_29 = arith.constant 0 : index
      %c0_30 = arith.constant 0 : index
      %42 = vector.load %arg4[%c0_29, %c0_30] : memref<384x1xf32, #tpu.memory_space<vmem>>, vector<384x1xf32>
      %43 = vector.broadcast %42 : vector<384x1xf32> to vector<384x128xf32>
      %44 = arith.addf %41, %43 : vector<384x128xf32>
      %45 = arith.truncf %44 : vector<384x128xf32> to vector<384x128xbf16>
      %c0_31 = arith.constant 0 : index
      %c0_32 = arith.constant 0 : index
      %c0_33 = arith.constant 0 : index
      %46 = vector.load %arg8[%c0_31, %c0_32, %c0_33] : memref<1x384x128xbf16, #tpu.memory_space<vmem>>, vector<1x384x128xbf16>
      %47 = vector.shape_cast %46 : vector<1x384x128xbf16> to vector<384x128xbf16>
      %48 = vector.shape_cast %45 : vector<384x128xbf16> to vector<1x384x128xbf16>
      tpu.vector_store %arg8[%c0_31, %c0_32, %c0_33], %48 {strides = array<i32>} : memref<1x384x128xbf16, #tpu.memory_space<vmem>>, vector<1x384x128xbf16>,
      %cst_34 = arith.constant 0.000000e+00 : f32
      %49 = vector.broadcast %cst_34 : f32 to vector<256x128xf32>
      %c0_35 = arith.constant 0 : index
      %c0_36 = arith.constant 0 : index
      %c0_37 = arith.constant 0 : index
      %50 = vector.load %arg9[%c0_35, %c0_36, %c0_37] : memref<1x256x128xf32, #tpu.memory_space<vmem>>, vector<1x256x128xf32>
      %51 = vector.shape_cast %50 : vector<1x256x128xf32> to vector<256x128xf32>
      %52 = vector.shape_cast %49 : vector<256x128xf32> to vector<1x256x128xf32>
      tpu.vector_store %arg9[%c0_35, %c0_36, %c0_37], %52 {strides = array<i32>} : memref<1x256x128xf32, #tpu.memory_space<vmem>>, vector<1x256x128xf32>,
      %cst_38 = arith.constant 0.000000e+00 : f32
      %53 = vector.broadcast %cst_38 : f32 to vector<1x128xf32>
      %c0_39 = arith.constant 0 : index
      %c0_40 = arith.constant 0 : index
      %c0_41 = arith.constant 0 : index
      %54 = vector.load %arg10[%c0_39, %c0_40, %c0_41] : memref<1x1x128xf32, #tpu.memory_space<vmem>>, vector<1x1x128xf32>
      %55 = vector.shape_cast %54 : vector<1x1x128xf32> to vector<1x128xf32>
      %56 = vector.shape_cast %53 : vector<1x128xf32> to vector<1x1x128xf32>
      tpu.vector_store %arg10[%c0_39, %c0_40, %c0_41], %56 {strides = array<i32>} : memref<1x1x128xf32, #tpu.memory_space<vmem>>, vector<1x1x128xf32>,
    } else {
    }
    %c0 = arith.constant 0 : index
    %c0_1 = arith.constant 0 : index
    %c0_2 = arith.constant 0 : index
    %3 = vector.load %arg8[%c0, %c0_1, %c0_2] : memref<1x384x128xbf16, #tpu.memory_space<vmem>>, vector<1x128x128xbf16>
    %4 = vector.shape_cast %3 : vector<1x128x128xbf16> to vector<128x128xbf16>
    %c0_3 = arith.constant 0 : index
    %c128 = arith.constant 128 : index
    %c0_4 = arith.constant 0 : index
    %5 = vector.load %arg8[%c0_3, %c128, %c0_4] : memref<1x384x128xbf16, #tpu.memory_space<vmem>>, vector<1x256x128xbf16>
    %6 = vector.shape_cast %5 : vector<1x256x128xbf16> to vector<256x128xbf16>
    %cst = arith.constant dense<0.000000e+00> : vector<128x128xf32>
    %7 = tpu.matmul %4, %4, %cst {dimension_numbers = #tpu.dot_dimension_numbers<[0], [0], [1], [1], [0, 1, 1, 1], [], []>} : vector<128x128xbf16>, vector<128x128xbf16>, vector<128x128xf32> -> vector<128x128xf32>
    %cst_5 = arith.constant dense<0xFF800000> : vector<128xf32>
    %8 = vector.multi_reduction <maximumf>, %7, %cst_5 [1] : vector<128x128xf32> to vector<128xf32>
    %9 = vector.shape_cast %8 : vector<128xf32> to vector<128x1xf32>
    %10 = vector.broadcast %9 : vector<128x1xf32> to vector<128x128xf32>
    %11 = arith.subf %7, %10 : vector<128x128xf32>
    %12 = math.exp %11 : vector<128x128xf32>
    %cst_6 = arith.constant dense<0.000000e+00> : vector<128xf32>
    %13 = vector.multi_reduction <add>, %12, %cst_6 [1] : vector<128x128xf32> to vector<128xf32>
    %14 = vector.shape_cast %13 : vector<128xf32> to vector<128x1xf32>
    %15 = tpu.reciprocal %14 {approx = true} : vector<128x1xf32> -> vector<128x1xf32>
    %16 = vector.broadcast %15 : vector<128x1xf32> to vector<128x128xf32>
    %17 = arith.mulf %12, %16 : vector<128x128xf32>
    %c0_7 = arith.constant 0 : index
    %c0_8 = arith.constant 0 : index
    %c0_9 = arith.constant 0 : index
    %18 = vector.load %arg10[%c0_7, %c0_8, %c0_9] : memref<1x1x128xf32, #tpu.memory_space<vmem>>, vector<1x1x128xf32>
    %19 = vector.shape_cast %18 : vector<1x1x128xf32> to vector<1x128xf32>
    %cst_10 = arith.constant dense<0.000000e+00> : vector<128xf32>
    %20 = vector.multi_reduction <add>, %17, %cst_10 [0] : vector<128x128xf32> to vector<128xf32>
    %21 = vector.shape_cast %20 : vector<128xf32> to vector<1x128xf32>
    %22 = arith.addf %19, %21 : vector<1x128xf32>
    %c0_11 = arith.constant 0 : index
    %c0_12 = arith.constant 0 : index
    %c0_13 = arith.constant 0 : index
    %23 = vector.load %arg10[%c0_11, %c0_12, %c0_13] : memref<1x1x128xf32, #tpu.memory_space<vmem>>, vector<1x1x128xf32>
    %24 = vector.shape_cast %23 : vector<1x1x128xf32> to vector<1x128xf32>
    %25 = vector.shape_cast %22 : vector<1x128xf32> to vector<1x1x128xf32>
    tpu.vector_store %arg10[%c0_11, %c0_12, %c0_13], %25 {strides = array<i32>} : memref<1x1x128xf32, #tpu.memory_space<vmem>>, vector<1x1x128xf32>,
    %c0_14 = arith.constant 0 : index
    %c0_15 = arith.constant 0 : index
    %c0_16 = arith.constant 0 : index
    %26 = vector.load %arg9[%c0_14, %c0_15, %c0_16] : memref<1x256x128xf32, #tpu.memory_space<vmem>>, vector<1x256x128xf32>
    %27 = vector.shape_cast %26 : vector<1x256x128xf32> to vector<256x128xf32>
    %28 = arith.truncf %17 : vector<128x128xf32> to vector<128x128xbf16>
    %cst_17 = arith.constant dense<0.000000e+00> : vector<256x128xf32>
    %29 = tpu.matmul %6, %28, %cst_17 {dimension_numbers = #tpu.dot_dimension_numbers<[1], [0], [0], [1], [0, 0, 1, 1], [], []>} : vector<256x128xbf16>, vector<128x128xbf16>, vector<256x128xf32> -> vector<256x128xf32>
    %30 = arith.addf %27, %29 : vector<256x128xf32>
    %c0_18 = arith.constant 0 : index
    %c0_19 = arith.constant 0 : index
    %c0_20 = arith.constant 0 : index
    %31 = vector.load %arg9[%c0_18, %c0_19, %c0_20] : memref<1x256x128xf32, #tpu.memory_space<vmem>>, vector<1x256x128xf32>
    %32 = vector.shape_cast %31 : vector<1x256x128xf32> to vector<256x128xf32>
    %33 = vector.shape_cast %30 : vector<256x128xf32> to vector<1x256x128xf32>
    tpu.vector_store %arg9[%c0_18, %c0_19, %c0_20], %33 {strides = array<i32>} : memref<1x256x128xf32, #tpu.memory_space<vmem>>, vector<1x256x128xf32>,
    %c0_i32_21 = arith.constant 0 : i32
    %34 = arith.cmpi eq, %arg1, %c0_i32_21 : i32
    %35 = arith.extui %34 : i1 to i32
    %c0_i32_22 = arith.constant 0 : i32
    %36 = arith.cmpi ne, %35, %c0_i32_22 : i32
    scf.if %36 {
      %c0_23 = arith.constant 0 : index
      %c0_24 = arith.constant 0 : index
      %c0_25 = arith.constant 0 : index
      %37 = vector.load %arg2[%c0_23, %c0_24, %c0_25] : memref<1x256x128xf32, #tpu.memory_space<vmem>>, vector<1x256x128xf32>
      %38 = vector.shape_cast %37 : vector<1x256x128xf32> to vector<256x128xf32>
      %c0_26 = arith.constant 0 : index
      %c0_27 = arith.constant 0 : index
      %c0_28 = arith.constant 0 : index
      %39 = vector.load %arg10[%c0_26, %c0_27, %c0_28] : memref<1x1x128xf32, #tpu.memory_space<vmem>>, vector<1x1x128xf32>
      %40 = vector.shape_cast %39 : vector<1x1x128xf32> to vector<1x128xf32>
      %cst_29 = arith.constant 9.99999971E-10 : f32
      %41 = vector.broadcast %cst_29 : f32 to vector<1x128xf32>
      %42 = arith.addf %41, %40 : vector<1x128xf32>
      %cst_30 = arith.constant 1.000000e+00 : f32
      %43 = vector.broadcast %cst_30 : f32 to vector<1x128xf32>
      %44 = arith.divf %43, %42 : vector<1x128xf32>
      %c0_31 = arith.constant 0 : index
      %c0_32 = arith.constant 0 : index
      %c0_33 = arith.constant 0 : index
      %45 = vector.load %arg9[%c0_31, %c0_32, %c0_33] : memref<1x256x128xf32, #tpu.memory_space<vmem>>, vector<1x256x128xf32>
      %46 = vector.shape_cast %45 : vector<1x256x128xf32> to vector<256x128xf32>
      %47 = vector.broadcast %44 : vector<1x128xf32> to vector<256x128xf32>
      %48 = arith.mulf %46, %47 : vector<256x128xf32>
      %c0_34 = arith.constant 0 : index
      %c0_35 = arith.constant 0 : index
      %49 = vector.load %arg5[%c0_34, %c0_35] : memref<256x256xbf16, #tpu.memory_space<vmem>>, vector<256x256xbf16>
      %50 = arith.subf %38, %48 : vector<256x128xf32>
      %51 = arith.truncf %50 : vector<256x128xf32> to vector<256x128xbf16>
      %cst_36 = arith.constant dense<0.000000e+00> : vector<256x128xf32>
      %52 = tpu.matmul %49, %51, %cst_36 {dimension_numbers = #tpu.dot_dimension_numbers<[1], [0], [0], [1], [0, 0, 1, 1], [], []>} : vector<256x256xbf16>, vector<256x128xbf16>, vector<256x128xf32> -> vector<256x128xf32>
      %c0_37 = arith.constant 0 : index
      %c0_38 = arith.constant 0 : index
      %53 = vector.load %arg6[%c0_37, %c0_38] : memref<256x1xf32, #tpu.memory_space<vmem>>, vector<256x1xf32>
      %54 = vector.broadcast %53 : vector<256x1xf32> to vector<256x128xf32>
      %55 = arith.addf %52, %54 : vector<256x128xf32>
      %cst_39 = arith.constant 0.000000e+00 : f32
      %56 = vector.broadcast %cst_39 : f32 to vector<256x128xf32>
      %57 = arith.maximumf %55, %56 : vector<256x128xf32>
      %58 = arith.addf %38, %57 : vector<256x128xf32>
      %c0_40 = arith.constant 0 : index
      %c0_41 = arith.constant 0 : index
      %c0_42 = arith.constant 0 : index
      %59 = vector.load %arg7[%c0_40, %c0_41, %c0_42] : memref<1x256x128xf32, #tpu.memory_space<vmem>>, vector<1x256x128xf32>
      %60 = vector.shape_cast %59 : vector<1x256x128xf32> to vector<256x128xf32>
      %61 = vector.shape_cast %58 : vector<256x128xf32> to vector<1x256x128xf32>
      tpu.vector_store %arg7[%c0_40, %c0_41, %c0_42], %61 {strides = array<i32>} : memref<1x256x128xf32, #tpu.memory_space<vmem>>, vector<1x256x128xf32>,
    } else {
    }
    return
  }
  func.func @transform_0(%arg0: i32, %arg1: i32) -> (i32, i32, i32) {
    %c0_i32 = arith.constant 0 : i32
    %c0_i32_0 = arith.constant 0 : i32
    %c0_i32_1 = arith.constant 0 : i32
    return %arg0, %c0_i32, %c0_i32_0 : i32, i32, i32
  }
  func.func @transform_1(%arg0: i32, %arg1: i32) -> (i32, i32) {
    %c0_i32 = arith.constant 0 : i32
    %c0_i32_0 = arith.constant 0 : i32
    %c0_i32_1 = arith.constant 0 : i32
    return %c0_i32, %c0_i32_0 : i32, i32
  }
  func.func @transform_2(%arg0: i32, %arg1: i32) -> (i32, i32) {
    %c0_i32 = arith.constant 0 : i32
    %c0_i32_0 = arith.constant 0 : i32
    %c0_i32_1 = arith.constant 0 : i32
    return %c0_i32, %c0_i32_0 : i32, i32
  }
  func.func @transform_3(%arg0: i32, %arg1: i32) -> (i32, i32) {
    %c0_i32 = arith.constant 0 : i32
    %c0_i32_0 = arith.constant 0 : i32
    %c0_i32_1 = arith.constant 0 : i32
    return %c0_i32, %c0_i32_0 : i32, i32
  }
  func.func @transform_4(%arg0: i32, %arg1: i32) -> (i32, i32) {
    %c0_i32 = arith.constant 0 : i32
    %c0_i32_0 = arith.constant 0 : i32
    %c0_i32_1 = arith.constant 0 : i32
    return %c0_i32, %c0_i32_0 : i32, i32
  }
  func.func @transform_5(%arg0: i32, %arg1: i32) -> (i32, i32, i32) {
    %c0_i32 = arith.constant 0 : i32
    %c0_i32_0 = arith.constant 0 : i32
    %c0_i32_1 = arith.constant 0 : i32
    return %arg0, %c0_i32, %c0_i32_0 : i32, i32, i32
  }
}

</mosaic_0001>

<bundles_post_ra>
// kernel: sa_layer.1
= control target key start
LH: loop header
LB: loop body
LE: loop exit
PB: predicated region body
PF: predicated region fallthrough
CT: control target
= control target key end

     0   :  { %10 = vsyncpa [#allocation6], 0  ;;  %s4448_s0 = inlined_call_operand.vmem [shape: f32[2,256,128], index: 0, kind: input, shape index: {}]   ;;  %s4449_s1 = inlined_call_operand.vmem [shape: bf16[384,256], index: 1, kind: input, shape index: {}]   ;;  %s4450_s2 = inlined_call_operand.vmem [shape: f32[384,1], index: 2, kind: input, shape index: {}]   ;;  %s4451_s3 = inlined_call_operand.vmem [shape: bf16[256,256], index: 3, kind: input, shape index: {}]   ;;  %s4452_s4 = inlined_call_operand.vmem [shape: f32[256,1], index: 4, kind: input, shape index: {}]   ;;  %s4453_s5 = inlined_call_operand.hbm [shape: f32[2,256,128], index: 5, kind: output, shape index: {}]  }
   0x1   :  { %12 = vsyncpa [#allocation6 + $0x1], 0  ;;  %s3311_s18 = smov 0   ;;  %s3313_s19 = smov 0  }
   0x2   :  { %s3315_s20 = smov 0   ;;  %s3317_s21 = smov 0  }
   0x3   :  { %s3319_s22 = smov 0   ;;  %s3321_s23 = smov 0  }
   0x4 LB: > { %s2622_s24 = sadd.s32 4294967295, %s3274_s23   ;;  %s2623_s25 = sadd.s32 4294967294, %s3274_s23   ;;  %s3274_s23 = sphi %s3321_s23, %s18_s23   ;;  %s3270_s22 = sphi %s3319_s22, %s4460_s22   ;;  %s3266_s21 = sphi %s3317_s21, %s4459_s21   ;;  %s3262_s20 = sphi %s3315_s20, %s4458_s20   ;;  %s3258_s19 = sphi %s3313_s19, %s4457_s19   ;;  %s3254_s18 = sphi %s3311_s18, %s4456_s18  }
   0x5   : > { %s30_s26 = sadd.s32 1, %s3270_s22  ;;  %s147_s27 = sadd.s32 1, %s3262_s20 }
   0x6   : > { %p32_p0 = scmp.ge.s32.totalorder %s30_s26, 2  ;;  %p157_p1 = scmp.ne.s32.totalorder %s3262_s20, %s3258_s19 }
   0x7   : > { %p158_p2 = scmp.eq.s32.totalorder %s2622_s24, 1  ;;  %p163_p3 = scmp.ne.s32.totalorder %s3258_s19, %s3254_s18 }
   0x8   : > { %s4462_s26 = smov (%p32_p0, %s30_s26), 0  ;;  %p164_p5 = scmp.eq.s32.totalorder %s2623_s25, 1 }
   0x9   : > { %p3351_p4 = por %p158_p2, %p157_p1  ;;  %s144_s29 = ssub.s32 %s3270_s22, %s4462_s26 }
   0xa   : > { %p2626_p6 = scmp.ge.s32.totalorder %s3274_s23, 1  ;;  %p145_p7 = scmp.eq.s32.totalorder %s144_s29, 0 }
   0xb   : > { %p3358_p8 = por %p164_p5, %p163_p3  ;;  %p202_p9 = scmp.lt.s32.totalorder %s3274_s23, 3 }
   0xc   : > { %s3364_s6 = scalar_select %p145_p7, %s3262_s20, %s147_s27  }
   0xd   : > { %p203_p10 = pnand %p2626_p6, %p202_p9 }
   0xe   : > { %p230_p11 = scmp.lt.s32.totalorder (!%p203_p10), %s3266_s21, 1  ;;  %v3276_v0 = vmov (!%p203_p10), 0   ;;  %v3012_v1 = vld [vmem:[%s4449_s1 + $0x4] ss:$8 sps:$4 sm:$0xff] (!%p203_p10)   ;;  %v338_v18 = vld [vmem:[%s4450_s2 + $0x10] sm:$0xff] (!%p203_p10)  ;;  %v339_v22 = vld [vmem:[%s4450_s2 + $0x18] sm:$0xff] (!%p203_p10) }
   0xf   : > { %206 = sbr.rel (%p203_p10) target bundleno = 1667 (0x683), region = 40  ;;  %864 = vmatprep.subr.bf16.mxu0 (!%p203_p10), %v3276_v0  ;;  %3008 = vset.pattern.permute.xlu0 (!%p203_p10), %v3276_v0  ;;  %v336_v17 = vld [vmem:[%s4450_s2] sm:$0xff] (!%p203_p10)  ;;  %v337_v21 = vld [vmem:[%s4450_s2 + $0x8] sm:$0xff] (!%p203_p10)  ;;  %v342_v31 = vld [vmem:[%s4450_s2 + $0x30] sm:$0xff] (!%p203_p10)  ;;  %s227_s25 = sand.u32 (!%p203_p10), 1, %s3258_s19  }
  0x10   : > { %3009 = vset.pattern.permute.xlu1 (!%p203_p10), %v3276_v0  ;;  %896 = vmatprep.mubr.bf16.mxu0 (!%p203_p10), %v3012_v1  ;;  %v340_v26 = vld [vmem:[%s4450_s2 + $0x20] sm:$0xff] (!%p203_p10)  ;;  %v341_v27 = vld [vmem:[%s4450_s2 + $0x28] sm:$0xff] (!%p203_p10)  ;;  %v343_v32 = vld [vmem:[%s4450_s2 + $0x38] sm:$0xff] (!%p203_p10)  ;;  %s2627_s27 = sshll.u32 (!%p203_p10), %s227_s25, 8  ;;  %s2716_s7 = sshll.u32 (!%p203_p10), %s3266_s21, 12 }
  0x11   : > { %386 = vperm.xlu0 (!%p203_p10), %3008, %v336_v17   ;;  %396 = vperm.xlu1 (!%p203_p10), %3009, %v338_v18   ;;  %v344_v36 = vld [vmem:[%s4450_s2 + $0x40] sm:$0xff] (!%p203_p10)  ;;  %v345_v37 = vld [vmem:[%s4450_s2 + $0x48] sm:$0xff] (!%p203_p10)  ;;  %v346_v41 = vld [vmem:[%s4450_s2 + $0x50] sm:$0xff] (!%p203_p10)  ;;  %s4326_s29 = scalar_lea.vmem (!%p203_p10), [#allocation5], %s2627_s27  ;;  %s4393_s11 = scalar_lea.hbm (!%p203_p10), %s4453_s5, %s2716_s7 }
  0x12   : > { %v347_v42 = vld [vmem:[%s4450_s2 + $0x58] sm:$0xff] (!%p203_p10)  ;;  %v348_v46 = vld [vmem:[%s4450_s2 + $0x60] sm:$0xff] (!%p203_p10)  ;;  %v349_v47 = vld [vmem:[%s4450_s2 + $0x68] sm:$0xff] (!%p203_p10)  ;;  %s2552_s8 = sshll.u32 (!%p203_p10), %s4326_s29, 4  ;;  %s3278_s14 = smov (!%p203_p10), [#allocation5]   ;;  %s4395_s8 = int_to_ptr.vmem [resolvable:$true] %s2552_s8 }
  0x13   : > { %v350_v51 = vld [vmem:[%s4450_s2 + $0x70] sm:$0xff] (!%p203_p10)  ;;  %v351_v52 = vld [vmem:[%s4450_s2 + $0x78] sm:$0xff] (!%p203_p10)  ;;  %s3196_s12 = scalar_lea.vmem (!%p203_p10), %s4395_s8, 4096  ;;  %s3200_s15 = sshll.u32 (!%p203_p10), %s3278_s14, 4  ;;  %s3201_s15 = int_to_ptr.vmem [resolvable:$false] %s3200_s15 }
  0x14   : > { %p3197_p12 = scmp.ne.s32.totalorder (!%p203_p10), %s4395_s8, %s3196_s12  ;;  %s3202_s16 = scalar_lea.vmem (!%p203_p10), %s3201_s15, 8192 }
  0x15   : > { %391 = vperm.xlu0 (!%p203_p10), %3008, %v337_v21   ;;  %401 = vperm.xlu1 (!%p203_p10), %3009, %v339_v22   ;;  %p3203_p1 = scmp.lt.s32.totalorder (!%p203_p10), %s4395_s8, %s3201_s15  ;;  %p3204_p2 = scmp.lt.s32.totalorder (!%p203_p10), %s3202_s16, %s3196_s12 }
  0x16   : > { %s231_s9 = scalar_select %p230_p11, %s3266_s21, 1 }
  0x17   : > { %s4402_s21 = scalar_lea.sflag [#allocation6], %s227_s25  ;;  %p3198_p13 = pnand %p3197_p12, %p3351_p4 }
  0x18   : > { %s2715_s10 = sshll.u32 %s231_s9, 8  ;;  %p3205_p3 = por %p3204_p2, %p3203_p1 }
  0x19   : > { %s3377_s13 = scalar_lea.vmem %s4448_s0, %s2715_s10  ;;  %406 = vperm.xlu0 %3008, %v340_v26   ;;  %411 = vperm.xlu1 %3009, %v341_v27   ;;  %p3199_p0 = pneg %p3198_p13 }
  0x1a   : > { %v240_v2 = vld [vmem:[%s3377_s13] sm:$0xff]  ;;  %v241_v3 = vld [vmem:[%s3377_s13 + $0x8] sm:$0xff]  ;;  %v242_v4 = vld [vmem:[%s3377_s13 + $0x10] sm:$0xff] }
  0x1b   : > { %v272_v5 = vpack.c.bf16 %v241_v3, %v240_v2  ;;  %v243_v6 = vld [vmem:[%s3377_s13 + $0x18] sm:$0xff]  ;;  %v244_v8 = vld [vmem:[%s3377_s13 + $0x20] sm:$0xff]  ;;  %v245_v9 = vld [vmem:[%s3377_s13 + $0x28] sm:$0xff]  ;;  %p3206_p5 = pnand %p3205_p3, %p3199_p0 }
  0x1c   : > { %v273_v7 = vpack.c.bf16 %v243_v6, %v242_v4  ;;  %v274_v10 = vpack.c.bf16 %v245_v9, %v244_v8  ;;  %v246_v11 = vld [vmem:[%s3377_s13 + $0x30] sm:$0xff]  ;;  %v247_v12 = vld [vmem:[%s3377_s13 + $0x38] sm:$0xff]  ;;  %v248_v14 = vld [vmem:[%s3377_s13 + $0x40] sm:$0xff] }
  0x1d   : > { %865 = vmatpush1.bf16.msra.mxu0 %v272_v5  ;;  %v275_v13 = vpack.c.bf16 %v247_v12, %v246_v11  ;;  %v249_v15 = vld [vmem:[%s3377_s13 + $0x48] sm:$0xff]  ;;  %v250_v19 = vld [vmem:[%s3377_s13 + $0x50] sm:$0xff]  ;;  %v251_v20 = vld [vmem:[%s3377_s13 + $0x58] sm:$0xff]  ;;  %416 = vperm.xlu0 %3008, %v342_v31  }
  0x1e   : > { %866 = vmatprep.subr.bf16.mxu0 %v3276_v0  ;;  %v276_v16 = vpack.c.bf16 %v249_v15, %v248_v14  ;;  %v277_v23 = vpack.c.bf16 %v251_v20, %v250_v19  ;;  %v252_v24 = vld [vmem:[%s3377_s13 + $0x60] sm:$0xff]  ;;  %v253_v25 = vld [vmem:[%s3377_s13 + $0x68] sm:$0xff]  ;;  %v254_v28 = vld [vmem:[%s3377_s13 + $0x70] sm:$0xff]  ;;  %421 = vperm.xlu1 %3009, %v343_v32  }
  0x1f   : > { %v255_v29 = vld [vmem:[%s3377_s13 + $0x78] sm:$0xff]  ;;  %v278_v30 = vpack.c.bf16 %v253_v25, %v252_v24  ;;  %v256_v33 = vld [vmem:[%s3377_s13 + $0x80] sm:$0xff]  ;;  %v257_v34 = vld [vmem:[%s3377_s13 + $0x88] sm:$0xff] }
  0x20   : > { %v279_v35 = vpack.c.bf16 %v255_v29, %v254_v28  ;;  %v258_v38 = vld [vmem:[%s3377_s13 + $0x90] sm:$0xff]  ;;  %v259_v39 = vld [vmem:[%s3377_s13 + $0x98] sm:$0xff]  ;;  %v280_v40 = vpack.c.bf16 %v257_v34, %v256_v33  ;;  %v260_v43 = vld [vmem:[%s3377_s13 + $0xa0] sm:$0xff] }
  0x21   : > { %867 = vmatpush1.bf16.msra.mxu0 %v273_v7  ;;  %426 = vperm.xlu0 %3008, %v344_v36   ;;  %v261_v44 = vld [vmem:[%s3377_s13 + $0xa8] sm:$0xff]  ;;  %v281_v45 = vpack.c.bf16 %v259_v39, %v258_v38  ;;  %v262_v48 = vld [vmem:[%s3377_s13 + $0xb0] sm:$0xff]  ;;  %v263_v49 = vld [vmem:[%s3377_s13 + $0xb8] sm:$0xff] }
  0x22   : > { %868 = vmatprep.subr.bf16.mxu0 %v3276_v0  ;;  %431 = vperm.xlu1 %3009, %v345_v37   ;;  %v282_v50 = vpack.c.bf16 %v261_v44, %v260_v43  ;;  %v283_v53 = vpack.c.bf16 %v263_v49, %v262_v48  ;;  %v264_v54 = vld [vmem:[%s3377_s13 + $0xc0] sm:$0xff]  ;;  %v265_v55 = vld [vmem:[%s3377_s13 + $0xc8] sm:$0xff]  ;;  %v266_v57 = vld [vmem:[%s3377_s13 + $0xd0] sm:$0xff] }
  0x23   : > { %v284_v56 = vpack.c.bf16 %v265_v55, %v264_v54  ;;  %v267_v58 = vld [vmem:[%s3377_s13 + $0xd8] sm:$0xff]  ;;  %v268_v60 = vld [vmem:[%s3377_s13 + $0xe0] sm:$0xff]  ;;  %v269_v61 = vld [vmem:[%s3377_s13 + $0xe8] sm:$0xff] }
  0x24   : > { %v285_v59 = vpack.c.bf16 %v267_v58, %v266_v57  ;;  %v286_v62 = vpack.c.bf16 %v269_v61, %v268_v60  ;;  %v270_v63 = vld [vmem:[%s3377_s13 + $0xf0] sm:$0xff]  ;;  %v271_v1 = vld [vmem:[%s3377_s13 + $0xf8] sm:$0xff]  ;;  %v3010_v3 = vld [vmem:[%s4449_s1] ss:$8 sps:$4 sm:$0xff]  }
  0x25   : > { %869 = vmatpush1.bf16.msra.mxu0 %v274_v10  ;;  %436 = vperm.xlu0 %3008, %v346_v41   ;;  %v287_v2 = vpack.c.bf16 %v271_v1, %v270_v63  ;;  %v3013_v4 = vld [vmem:[%s4449_s1 + $0x14] ss:$8 sps:$4 sm:$0xff]   ;;  %v3015_v5 = vld [vmem:[%s4449_s1 + $0x10] ss:$8 sps:$4 sm:$0xff]   ;;  %v3016_v6 = vld [vmem:[%s4449_s1 + $0x24] ss:$8 sps:$4 sm:$0xff]  }
  0x26   : > { %870 = vmatprep.subr.bf16.mxu0 %v3276_v0  ;;  %441 = vperm.xlu1 %3009, %v347_v42   ;;  %v3019_v7 = vld [vmem:[%s4449_s1 + $0x34] ss:$8 sps:$4 sm:$0xff]   ;;  %v3021_v8 = vld [vmem:[%s4449_s1 + $0x30] ss:$8 sps:$4 sm:$0xff]   ;;  %v3022_v9 = vld [vmem:[%s4449_s1 + $0x44] ss:$8 sps:$4 sm:$0xff]  }
  0x27   : > { %v3024_v10 = vld [vmem:[%s4449_s1 + $0x40] ss:$8 sps:$4 sm:$0xff]   ;;  %v3025_v11 = vld [vmem:[%s4449_s1 + $0x54] ss:$8 sps:$4 sm:$0xff]   ;;  %v3027_v12 = vld [vmem:[%s4449_s1 + $0x50] ss:$8 sps:$4 sm:$0xff]  }
  0x28   : > { %v3030_v14 = vld [vmem:[%s4449_s1 + $0x60] ss:$8 sps:$4 sm:$0xff]   ;;  %v3031_v15 = vld [vmem:[%s4449_s1 + $0x74] ss:$8 sps:$4 sm:$0xff]  }
  0x29   : > { %871 = vmatpush1.bf16.msra.mxu0 %v275_v13  ;;  %446 = vperm.xlu0 %3008, %v348_v46   ;;  %v3028_v13 = vld [vmem:[%s4449_s1 + $0x64] ss:$8 sps:$4 sm:$0xff]   ;;  %v3036_v63 = vld [vmem:[%s4449_s1 + $0x80] ss:$8 sps:$4 sm:$0xff]   ;;  %v3037_v1 = vld [vmem:[%s4449_s1 + $0x94] ss:$8 sps:$4 sm:$0xff]  }
  0x2a   : > { %872 = vmatprep.subr.bf16.mxu0 %v3276_v0  ;;  %451 = vperm.xlu1 %3009, %v349_v47  }
  0x2d   : > { %873 = vmatpush1.bf16.msra.mxu0 %v276_v16  ;;  %456 = vperm.xlu0 %3008, %v350_v51   ;;  %v3033_v16 = vld [vmem:[%s4449_s1 + $0x70] ss:$8 sps:$4 sm:$0xff]  }
  0x2e   : > { %874 = vmatprep.subr.bf16.mxu0 %v3276_v0  ;;  %461 = vperm.xlu1 %3009, %v351_v52  }
  0x31   : > { %875 = vmatpush1.bf16.msra.mxu0 %v277_v23 }
  0x32   : > { %876 = vmatprep.subr.bf16.mxu0 %v3276_v0 }
  0x35   : > { %877 = vmatpush1.bf16.msra.mxu0 %v278_v30 }
  0x36   : > { %878 = vmatprep.subr.bf16.mxu0 %v3276_v0 }
  0x39   : > { %879 = vmatpush1.bf16.msra.mxu0 %v279_v35 }
  0x3a   : > { %880 = vmatprep.subr.bf16.mxu0 %v3276_v0 }
  0x3d   : > { %881 = vmatpush1.bf16.msra.mxu0 %v280_v40 }
  0x3e   : > { %882 = vmatprep.subr.bf16.mxu0 %v3276_v0 }
  0x41   : > { %883 = vmatpush1.bf16.msra.mxu0 %v281_v45 }
  0x42   : > { %884 = vmatprep.subr.bf16.mxu0 %v3276_v0 }
  0x45   : > { %885 = vmatpush1.bf16.msra.mxu0 %v282_v50 }
  0x46   : > { %886 = vmatprep.subr.bf16.mxu0 %v3276_v0 }
  0x49   : > { %887 = vmatpush1.bf16.msra.mxu0 %v283_v53 }
  0x4a   : > { %888 = vmatprep.subr.bf16.mxu0 %v3276_v0 }
  0x4d   : > { %889 = vmatpush1.bf16.msra.mxu0 %v284_v56 }
  0x4e   : > { %890 = vmatprep.subr.bf16.mxu0 %v3276_v0 }
  0x51   : > { %891 = vmatpush1.bf16.msra.mxu0 %v285_v59 }
  0x52   : > { %892 = vmatprep.subr.bf16.mxu0 %v3276_v0 }
  0x55   : > { %893 = vmatpush1.bf16.msra.mxu0 %v286_v62  ;;  %v3034_v62 = vld [vmem:[%s4449_s1 + $0x84] ss:$8 sps:$4 sm:$0xff]  }
  0x56   : > { %894 = vmatprep.subr.bf16.mxu0 %v3276_v0  ;;  %v3018_v0 = vld [vmem:[%s4449_s1 + $0x20] ss:$8 sps:$4 sm:$0xff]  }
  0x59   : > { %895 = vmatpush1.bf16.msra.mxu0 %v287_v2 }
  0x5c   : > { %897 = vmatmul.mubr.bf16.vlgmr.msra.gmra.mrb[0].mxu0 %v3010_v3 }
  0x5d   : > { %904 = vmatprep.mubr.bf16.mxu0 %v3013_v4 }
  0x64   : > { %905 = vmatmul.mubr.bf16.gmra.mrb[4].mxu0 %v3015_v5 }
  0x65   : > { %912 = vmatprep.mubr.bf16.mxu0 %v3016_v6 }
  0x6c   : > { %913 = vmatmul.mubr.bf16.gmra.mrb[8].mxu0 %v3018_v0 }
  0x6d   : > { %920 = vmatprep.mubr.bf16.mxu0 %v3019_v7 }
  0x74   : > { %921 = vmatmul.mubr.bf16.gmra.mrb[12].mxu0 %v3021_v8 }
  0x75   : > { %928 = vmatprep.mubr.bf16.mxu0 %v3022_v9 }
  0x7c   : > { %929 = vmatmul.mubr.bf16.gmra.mrb[16].mxu0 %v3024_v10  ;;  %v3039_v10 = vld [vmem:[%s4449_s1 + $0x90] ss:$8 sps:$4 sm:$0xff]  }
  0x7d   : > { %936 = vmatprep.mubr.bf16.mxu0 %v3025_v11 }
  0x84   : > { %937 = vmatmul.mubr.bf16.gmra.mrb[20].mxu0 %v3027_v12 }
  0x85   : > { %944 = vmatprep.mubr.bf16.mxu0 %v3028_v13 }
  0x8c   : > { %945 = vmatmul.mubr.bf16.gmra.mrb[24].mxu0 %v3030_v14 }
  0x8d   : > { %952 = vmatprep.mubr.bf16.mxu0 %v3031_v15 }
  0x90   : > { %v387_v17 = vpop.permute.xlu0 %386  ;;  %v397_v25 = vpop.permute.xlu1 %396 }
  0x94   : > { %953 = vmatmul.mubr.bf16.gmra.mrb[28].mxu0 %v3033_v16  ;;  %v392_v19 = vpop.permute.xlu0 %391  ;;  %v402_v29 = vpop.permute.xlu1 %401 }
  0x95   : > { %960 = vmatprep.mubr.bf16.mxu0 %v3034_v62 }
  0x98   : > { %v407_v36 = vpop.permute.xlu0 %406  ;;  %v412_v38 = vpop.permute.xlu1 %411 }
  0x9c   : > { %v417_v45 = vpop.permute.xlu0 %416  ;;  %961 = vmatmul.mubr.bf16.gmra.mrb[32].mxu0 %v3036_v63  ;;  %v3066_v63 = vld [vmem:[%s4449_s1 + $0x120] ss:$8 sps:$4 sm:$0xff]  }
  0x9d   : > { %v422_v47 = vpop.permute.xlu1 %421  ;;  %968 = vmatprep.mubr.bf16.mxu0 %v3037_v1 }
  0xa0   : > { %v427_v54 = vpop.permute.xlu0 %426 }
  0xa1   : > { %v432_v56 = vpop.permute.xlu1 %431 }
  0xa4   : > { %v437_v3 = vpop.permute.xlu0 %436  ;;  %969 = vmatmul.mubr.bf16.gmra.mrb[36].mxu0 %v3039_v10  ;;  %v3072_v10 = vld [vmem:[%s4449_s1 + $0x140] ss:$8 sps:$4 sm:$0xff]  }
  0xa5   : > { %v442_v5 = vpop.permute.xlu1 %441 }
  0xa8   : > { %v447_v12 = vpop.permute.xlu0 %446 }
  0xa9   : > { %v452_v14 = vpop.permute.xlu1 %451 }
 0x12f   : > { %v898_v18 = vpop.f32.mrb[0].mxu0 }
 0x130   : > { %v900_v20 = vpop.f32.mrb[1].mxu0  ;;  %v899_v22 = vadd.f32 %v898_v18, %v387_v17 }
 0x131   : > { %v901_v21 = vpop.f32.mrb[2].mxu0 }
 0x132   : > { %v902_v23 = vadd.f32 %v901_v21, %v392_v19  ;;  %v903_v24 = vpop.f32.mrb[3].mxu0  ;;  %v457_v21 = vpop.permute.xlu0 %456 }
 0x134   : > { %v1089_v26 = vpack.c.bf16 %v902_v23, %v899_v22  ;;  %v462_v23 = vpop.permute.xlu1 %461 }
 0x136   : > { %1194 = vxpose.xlu0.c.b16.start [1/8] %v1089_v26, 128  ;;  %2869 = vmatprep.subr.bf16.mxu1 %v1089_v26 }
 0x137   : > { %v906_v27 = vpop.f32.mrb[4].mxu0  ;;  %2870 = vmatpush3.bf16.msra.mxu1 %v1089_v26 }
 0x138   : > { %v908_v28 = vpop.f32.mrb[5].mxu0  ;;  %v907_v31 = vadd.f32 %v906_v27, %v397_v25 }
 0x139   : > { %v909_v30 = vpop.f32.mrb[6].mxu0 }
 0x13a   : > { %v910_v32 = vadd.f32 %v909_v30, %v402_v29  ;;  %v911_v33 = vpop.f32.mrb[7].mxu0 }
 0x13c   : > { %v1090_v34 = vpack.c.bf16 %v910_v32, %v907_v31 }
 0x13e   : > { %1195 = vxpose.xlu0.c.b16.cont [2/8] %v1090_v34, 128  ;;  %2871 = vmatprep.subr.bf16.mxu1 %v1090_v34 }
 0x13f   : > { %v914_v35 = vpop.f32.mrb[8].mxu0  ;;  %2872 = vmatpush3.bf16.msra.mxu1 %v1090_v34 }
 0x140   : > { %v916_v37 = vpop.f32.mrb[9].mxu0  ;;  %v915_v40 = vadd.f32 %v914_v35, %v407_v36 }
 0x141   : > { %v917_v39 = vpop.f32.mrb[10].mxu0  ;;  %v3040_v37 = vld [vmem:[%s4449_s1 + $0xa4] ss:$8 sps:$4 sm:$0xff]  }
 0x142   : > { %v918_v41 = vadd.f32 %v917_v39, %v412_v38  ;;  %v919_v42 = vpop.f32.mrb[11].mxu0  ;;  %v3042_v38 = vld [vmem:[%s4449_s1 + $0xa0] ss:$8 sps:$4 sm:$0xff]   ;;  %v3043_v39 = vld [vmem:[%s4449_s1 + $0xb4] ss:$8 sps:$4 sm:$0xff]   ;;  %976 = vmatprep.mubr.bf16.mxu0 %v3040_v37 }
 0x143   : > { %977 = vmatmul.mubr.bf16.gmra.mrb[40].mxu0 %v3042_v38  ;;  %v3048_v42 = vld [vmem:[%s4449_s1 + $0xc0] ss:$8 sps:$4 sm:$0xff]  }
 0x144   : > { %v1091_v43 = vpack.c.bf16 %v918_v41, %v915_v40  ;;  %984 = vmatprep.mubr.bf16.mxu0 %v3043_v39  ;;  %v3045_v40 = vld [vmem:[%s4449_s1 + $0xb0] ss:$8 sps:$4 sm:$0xff]   ;;  %v3046_v41 = vld [vmem:[%s4449_s1 + $0xc4] ss:$8 sps:$4 sm:$0xff]  }
 0x146   : > { %1196 = vxpose.xlu0.c.b16.cont [3/8] %v1091_v43, 128  ;;  %2873 = vmatprep.subr.bf16.mxu1 %v1091_v43 }
 0x147   : > { %v922_v44 = vpop.f32.mrb[12].mxu0  ;;  %2874 = vmatpush3.bf16.msra.mxu1 %v1091_v43  ;;  %v3049_v43 = vld [vmem:[%s4449_s1 + $0xd4] ss:$8 sps:$4 sm:$0xff]  }
 0x148   : > { %v924_v46 = vpop.f32.mrb[13].mxu0  ;;  %v923_v49 = vadd.f32 %v922_v44, %v417_v45  ;;  %v3051_v44 = vld [vmem:[%s4449_s1 + $0xd0] ss:$8 sps:$4 sm:$0xff]   ;;  %v3052_v45 = vld [vmem:[%s4449_s1 + $0xe4] ss:$8 sps:$4 sm:$0xff]  }
 0x149   : > { %v925_v48 = vpop.f32.mrb[14].mxu0  ;;  %v3054_v46 = vld [vmem:[%s4449_s1 + $0xe0] ss:$8 sps:$4 sm:$0xff]  }
 0x14a   : > { %v926_v50 = vadd.f32 %v925_v48, %v422_v47  ;;  %v927_v51 = vpop.f32.mrb[15].mxu0  ;;  %v3055_v47 = vld [vmem:[%s4449_s1 + $0xf4] ss:$8 sps:$4 sm:$0xff]   ;;  %v3057_v48 = vld [vmem:[%s4449_s1 + $0xf0] ss:$8 sps:$4 sm:$0xff]  }
 0x14b   : > { %985 = vmatmul.mubr.bf16.gmra.mrb[44].mxu0 %v3045_v40  ;;  %v3061_v51 = vld [vmem:[%s4449_s1 + $0x114] ss:$8 sps:$4 sm:$0xff]  }
 0x14c   : > { %v1092_v52 = vpack.c.bf16 %v926_v50, %v923_v49  ;;  %992 = vmatprep.mubr.bf16.mxu0 %v3046_v41  ;;  %v3058_v49 = vld [vmem:[%s4449_s1 + $0x104] ss:$8 sps:$4 sm:$0xff]   ;;  %v3060_v50 = vld [vmem:[%s4449_s1 + $0x100] ss:$8 sps:$4 sm:$0xff]  }
 0x14e   : > { %1197 = vxpose.xlu0.c.b16.cont [4/8] %v1092_v52, 128  ;;  %2875 = vmatprep.subr.bf16.mxu1 %v1092_v52 }
 0x14f   : > { %v930_v53 = vpop.f32.mrb[16].mxu0  ;;  %2876 = vmatpush3.bf16.msra.mxu1 %v1092_v52  ;;  %v3063_v52 = vld [vmem:[%s4449_s1 + $0x110] ss:$8 sps:$4 sm:$0xff]  }
 0x150   : > { %v932_v55 = vpop.f32.mrb[17].mxu0  ;;  %v931_v58 = vadd.f32 %v930_v53, %v427_v54 }
 0x151   : > { %v933_v57 = vpop.f32.mrb[18].mxu0 }
 0x152   : > { %v934_v59 = vadd.f32 %v933_v57, %v432_v56  ;;  %v935_v60 = vpop.f32.mrb[19].mxu0 }
 0x153   : > { %993 = vmatmul.mubr.bf16.gmra.mrb[48].mxu0 %v3048_v42 }
 0x154   : > { %v1093_v61 = vpack.c.bf16 %v934_v59, %v931_v58  ;;  %1000 = vmatprep.mubr.bf16.mxu0 %v3049_v43 }
 0x156   : > { %1198 = vxpose.xlu0.c.b16.cont [5/8] %v1093_v61, 128  ;;  %2877 = vmatprep.subr.bf16.mxu1 %v1093_v61 }
 0x157   : > { %v938_v2 = vpop.f32.mrb[20].mxu0  ;;  %2878 = vmatpush3.bf16.msra.mxu1 %v1093_v61  ;;  %v3064_v61 = vld [vmem:[%s4449_s1 + $0x124] ss:$8 sps:$4 sm:$0xff]  }
 0x158   : > { %v940_v4 = vpop.f32.mrb[21].mxu0  ;;  %v939_v0 = vadd.f32 %v938_v2, %v437_v3 }
 0x159   : > { %v941_v6 = vpop.f32.mrb[22].mxu0  ;;  %v3067_v4 = vld [vmem:[%s4449_s1 + $0x134] ss:$8 sps:$4 sm:$0xff]  }
 0x15a   : > { %v942_v7 = vadd.f32 %v941_v6, %v442_v5  ;;  %v943_v8 = vpop.f32.mrb[23].mxu0  ;;  %v3069_v6 = vld [vmem:[%s4449_s1 + $0x130] ss:$8 sps:$4 sm:$0xff]  }
 0x15b   : > { %1001 = vmatmul.mubr.bf16.gmra.mrb[52].mxu0 %v3051_v44 }
 0x15c   : > { %v1094_v9 = vpack.c.bf16 %v942_v7, %v939_v0  ;;  %1008 = vmatprep.mubr.bf16.mxu0 %v3052_v45 }
 0x15e   : > { %1199 = vxpose.xlu0.c.b16.cont [6/8] %v1094_v9, 128  ;;  %2879 = vmatprep.subr.bf16.mxu1 %v1094_v9 }
 0x15f   : > { %v946_v11 = vpop.f32.mrb[24].mxu0  ;;  %2880 = vmatpush3.bf16.msra.mxu1 %v1094_v9  ;;  %v3070_v9 = vld [vmem:[%s4449_s1 + $0x144] ss:$8 sps:$4 sm:$0xff]  }
 0x160   : > { %v948_v13 = vpop.f32.mrb[25].mxu0  ;;  %v947_v16 = vadd.f32 %v946_v11, %v447_v12  ;;  %v3073_v11 = vld [vmem:[%s4449_s1 + $0x154] ss:$8 sps:$4 sm:$0xff]   ;;  %v3075_v12 = vld [vmem:[%s4449_s1 + $0x150] ss:$8 sps:$4 sm:$0xff]  }
 0x161   : > { %v949_v15 = vpop.f32.mrb[26].mxu0  ;;  %v3076_v13 = vld [vmem:[%s4449_s1 + $0x164] ss:$8 sps:$4 sm:$0xff]  }
 0x162   : > { %v950_v17 = vadd.f32 %v949_v15, %v452_v14  ;;  %v951_v18 = vpop.f32.mrb[27].mxu0  ;;  %v3078_v14 = vld [vmem:[%s4449_s1 + $0x160] ss:$8 sps:$4 sm:$0xff]  }
 0x163   : > { %1009 = vmatmul.mubr.bf16.gmra.mrb[56].mxu0 %v3054_v46  ;;  %v353_v15 = vld [vmem:[%s4450_s2 + $0x88] sm:$0xff] }
 0x164   : > { %v1095_v19 = vpack.c.bf16 %v950_v17, %v947_v16  ;;  %1016 = vmatprep.mubr.bf16.mxu0 %v3055_v47 }
 0x166   : > { %1200 = vxpose.xlu0.c.b16.cont [7/8] %v1095_v19, 128  ;;  %2881 = vmatprep.subr.bf16.mxu1 %v1095_v19 }
 0x167   : > { %v954_v20 = vpop.f32.mrb[28].mxu0  ;;  %2882 = vmatpush3.bf16.msra.mxu1 %v1095_v19 }
 0x168   : > { %v956_v22 = vpop.f32.mrb[29].mxu0  ;;  %v955_v25 = vadd.f32 %v954_v20, %v457_v21  ;;  %v3079_v20 = vld [vmem:[%s4449_s1 + $0x174] ss:$8 sps:$4 sm:$0xff]   ;;  %v3081_v21 = vld [vmem:[%s4449_s1 + $0x170] ss:$8 sps:$4 sm:$0xff]  }
 0x169   : > { %v957_v24 = vpop.f32.mrb[30].mxu0  ;;  %v352_v22 = vld [vmem:[%s4450_s2 + $0x80] sm:$0xff] }
 0x16a   : > { %v958_v26 = vadd.f32 %v957_v24, %v462_v23  ;;  %v959_v27 = vpop.f32.mrb[31].mxu0  ;;  %v354_v23 = vld [vmem:[%s4450_s2 + $0x90] sm:$0xff] }
 0x16b   : > { %1017 = vmatmul.mubr.bf16.gmra.mrb[60].mxu0 %v3057_v48 }
 0x16c   : > { %v1096_v28 = vpack.c.bf16 %v958_v26, %v955_v25  ;;  %1024 = vmatprep.mubr.bf16.mxu0 %v3058_v49  ;;  %v355_v26 = vld [vmem:[%s4450_s2 + $0x98] sm:$0xff] }
 0x16e   : > { %1201 = vxpose.xlu0.c.b16.end [8/8] %v1096_v28, 128  ;;  %2883 = vmatprep.subr.bf16.mxu1 %v1096_v28 }
 0x16f   : > { %2884 = vmatpush3.bf16.msra.mxu1 %v1096_v28  ;;  %v3660_v16 = vpop.f32.mrb[32].mxu0 }
 0x170   : > { %v964_v17 = vpop.f32.mrb[33].mxu0 }
 0x171   : > { %v3662_v18 = vpop.f32.mrb[34].mxu0 }
 0x172   : > { %v967_v19 = vpop.f32.mrb[35].mxu0 }
 0x173   : > { %1025 = vmatmul.mubr.bf16.gmra.mrb[64].mxu0 %v3060_v50 }
 0x174   : > { %1032 = vmatprep.mubr.bf16.mxu0 %v3061_v51 }
 0x177   : > { %v3676_v24 = vpop.f32.mrb[36].mxu0 }
 0x178   : > { %v972_v25 = vpop.f32.mrb[37].mxu0 }
 0x179   : > { %v3681_v27 = vpop.f32.mrb[38].mxu0 }
 0x17a   : > { %v975_v28 = vpop.f32.mrb[39].mxu0 }
 0x17b   : > { %1033 = vmatmul.mubr.bf16.gmra.mrb[68].mxu0 %v3063_v52 }
 0x17c   : > { %1040 = vmatprep.mubr.bf16.mxu0 %v3064_v61 }
 0x183   : > { %1041 = vmatmul.mubr.bf16.gmra.mrb[72].mxu0 %v3066_v63 }
 0x184   : > { %1048 = vmatprep.mubr.bf16.mxu0 %v3067_v4 }
 0x18b   : > { %1049 = vmatmul.mubr.bf16.gmra.mrb[76].mxu0 %v3069_v6 }
 0x18c   : > { %1056 = vmatprep.mubr.bf16.mxu0 %v3070_v9 }
 0x193   : > { %1057 = vmatmul.mubr.bf16.gmra.mrb[80].mxu0 %v3072_v10 }
 0x194   : > { %1064 = vmatprep.mubr.bf16.mxu0 %v3073_v11 }
 0x19b   : > { %1065 = vmatmul.mubr.bf16.gmra.mrb[84].mxu0 %v3075_v12 }
 0x19c   : > { %1072 = vmatprep.mubr.bf16.mxu0 %v3076_v13 }
 0x1a3   : > { %1073 = vmatmul.mubr.bf16.gmra.mrb[88].mxu0 %v3078_v14 }
 0x1a4   : > { %1080 = vmatprep.mubr.bf16.mxu0 %v3079_v20 }
 0x1ab   : > { %1081 = vmatmul.mubr.bf16.gmra.mrb[92].mxu0 %v3081_v21 }
 0x1b8   : > { %v1202_v29 = vpop.trf.xlu0 }
 0x1b9   : > { %2885 = vmatprep.mubr.bf16.mxu1 %v1202_v29 }
 0x1bc   : > { %v1203_v30 = vpop.trf.xlu0 }
 0x1bd   : > { %2886 = vmatmul.mubr.bf16.vlgmr.msra.gmra.mrb[0].mxu1 %v1203_v30 }
 0x1c0   : > { %v1204_v31 = vpop.trf.xlu0 }
 0x1c1   : > { %2889 = vmatprep.mubr.bf16.mxu1 %v1204_v31 }
 0x1c4   : > { %v1205_v32 = vpop.trf.xlu0 }
 0x1c5   : > { %2890 = vmatmul.mubr.bf16.gmra.mrb[4].mxu1 %v1205_v32 }
 0x1c8   : > { %v1206_v33 = vpop.trf.xlu0 }
 0x1c9   : > { %2893 = vmatprep.mubr.bf16.mxu1 %v1206_v33 }
 0x1cc   : > { %v1207_v34 = vpop.trf.xlu0 }
 0x1cd   : > { %2894 = vmatmul.mubr.bf16.gmra.mrb[8].mxu1 %v1207_v34 }
 0x1d0   : > { %v1208_v35 = vpop.trf.xlu0 }
 0x1d1   : > { %2897 = vmatprep.mubr.bf16.mxu1 %v1208_v35 }
 0x1d4   : > { %v1209_v36 = vpop.trf.xlu0 }
 0x1d5   : > { %2898 = vmatmul.mubr.bf16.gmra.mrb[12].mxu1 %v1209_v36 }
 0x290   : > { %v3579_v53 = vpop.f32.mrb[0].mxu1 }
 0x291   : > { %1311 = vmax.xlane.f32.xlu1 %v3579_v53  ;;  %v3582_v54 = vpop.f32.mrb[1].mxu1 }
 0x292   : > { %v3584_v55 = vpop.f32.mrb[2].mxu1 }
 0x293   : > { %v3586_v56 = vpop.f32.mrb[3].mxu1 }
 0x295   : > { %1307 = vmax.xlane.f32.xlu1 %v3582_v54 }
 0x298   : > { %v3589_v57 = vpop.f32.mrb[4].mxu1 }
 0x299   : > { %1313 = vmax.xlane.f32.xlu1 %v3584_v55  ;;  %v3592_v58 = vpop.f32.mrb[5].mxu1 }
 0x29a   : > { %v3594_v59 = vpop.f32.mrb[6].mxu1 }
 0x29b   : > { %1321 = vmax.xlane.f32.xlu0 %v3594_v59  ;;  %v3597_v60 = vpop.f32.mrb[7].mxu1 }
 0x29d   : > { %1309 = vmax.xlane.f32.xlu1 %v3586_v56 }
 0x2a0   : > { %v3603_v62 = vpop.f32.mrb[8].mxu1 }
 0x2a1   : > { %1319 = vmax.xlane.f32.xlu1 %v3589_v57  ;;  %v3609_v1 = vpop.f32.mrb[9].mxu1 }
 0x2a2   : > { %v3611_v2 = vpop.f32.mrb[10].mxu1 }
 0x2a3   : > { %1329 = vmax.xlane.f32.xlu0 %v3611_v2  ;;  %v3614_v3 = vpop.f32.mrb[11].mxu1 }
 0x2a5   : > { %1315 = vmax.xlane.f32.xlu1 %v3592_v58 }
 0x2a8   : > { %v3620_v5 = vpop.f32.mrb[12].mxu1 }
 0x2a9   : > { %1317 = vmax.xlane.f32.xlu1 %v3597_v60  ;;  %v3626_v0 = vpop.f32.mrb[13].mxu1 }
 0x2aa   : > { %v3628_v7 = vpop.f32.mrb[14].mxu1 }
 0x2ab   : > { %v3630_v8 = vpop.f32.mrb[15].mxu1 }
 0x2ac   : > { %1333 = vmax.xlane.f32.xlu0 %v3630_v8 }
 0x2ad   : > { %1327 = vmax.xlane.f32.xlu1 %v3603_v62 }
 0x2b0   : > { %1337 = vmax.xlane.f32.xlu0 %v3628_v7 }
 0x2b1   : > { %1323 = vmax.xlane.f32.xlu1 %v3609_v1 }
 0x2b5   : > { %1325 = vmax.xlane.f32.xlu1 %v3614_v3 }
 0x2b9   : > { %1335 = vmax.xlane.f32.xlu1 %v3620_v5 }
 0x2bd   : > { %1331 = vmax.xlane.f32.xlu1 %v3626_v0 }
 0x2c6   : > { %471 = vperm.xlu0 %3008, %v353_v15  }
 0x2ce   : > { %466 = vperm.xlu1 %3009, %v352_v22  }
 0x2d2   : > { %476 = vperm.xlu1 %3009, %v354_v23  }
 0x2d6   : > { %481 = vperm.xlu1 %3009, %v355_v26  }
 0x31e   : > { %v1312_v29 = vpop.xlane.xlu1 %1311 }
 0x31f   : > { %v1341_v30 = vsub.f32 %v3579_v53, %v1312_v29 }
 0x321   : > { %v1359_v31 = vmul.f32 1.442695, %v1341_v30 }
 0x322   : > { %v1308_v32 = vpop.xlane.xlu1 %1307 }
 0x323   : > { %3130 = vpow2.f32 %v1359_v31  ;;  %v1339_v33 = vsub.f32 %v3582_v54, %v1308_v32 }
 0x325   : > { %v1355_v34 = vmul.f32 1.442695, %v1339_v33 }
 0x326   : > { %v1314_v35 = vpop.xlane.xlu1 %1313 }
 0x327   : > { %3132 = vpow2.f32 %v1355_v34  ;;  %v1342_v36 = vsub.f32 %v3584_v55, %v1314_v35 }
 0x328   : > { %v1322_v37 = vpop.xlane.xlu0 %1321 }
 0x329   : > { %v1361_v38 = vmul.f32 1.442695, %v1342_v36  ;;  %v1346_v39 = vsub.f32 %v3594_v59, %v1322_v37 }
 0x32a   : > { %v1310_v40 = vpop.xlane.xlu1 %1309 }
 0x32b   : > { %3134 = vpow2.f32 %v1361_v38  ;;  %v1340_v41 = vsub.f32 %v3586_v56, %v1310_v40  ;;  %v1369_v44 = vmul.f32 1.442695, %v1346_v39 }
 0x32d   : > { %v3688_v42 = vpop.eup %3130  ;;  %v1357_v43 = vmul.f32 1.442695, %v1340_v41 }
 0x32e   : > { %v1320_v45 = vpop.xlane.xlu1 %1319  ;;  %1391 = vadd.xlane.f32.xlu1 %v3688_v42 }
 0x32f   : > { %3136 = vpow2.f32 %v1357_v43  ;;  %v1345_v46 = vsub.f32 %v3589_v57, %v1320_v45 }
 0x330   : > { %3138 = vpow2.f32 %v1369_v44  ;;  %v1330_v50 = vpop.xlane.xlu0 %1329 }
 0x331   : > { %v3692_v47 = vpop.eup %3132  ;;  %v1367_v48 = vmul.f32 1.442695, %v1345_v46  ;;  %v1350_v54 = vsub.f32 %v3611_v2, %v1330_v50 }
 0x332   : > { %v1316_v49 = vpop.xlane.xlu1 %1315  ;;  %1387 = vadd.xlane.f32.xlu1 %v3692_v47 }
 0x333   : > { %3140 = vpow2.f32 %v1367_v48  ;;  %v1343_v51 = vsub.f32 %v3592_v58, %v1316_v49  ;;  %v1377_v63 = vmul.f32 1.442695, %v1350_v54 }
 0x335   : > { %v3696_v52 = vpop.eup %3134  ;;  %v1363_v53 = vmul.f32 1.442695, %v1343_v51 }
 0x336   : > { %v1318_v55 = vpop.xlane.xlu1 %1317  ;;  %1393 = vadd.xlane.f32.xlu0 %v3696_v52 }
 0x337   : > { %3142 = vpow2.f32 %v1363_v53  ;;  %v1344_v56 = vsub.f32 %v3597_v60, %v1318_v55 }
 0x339   : > { %v3701_v57 = vpop.eup %3136  ;;  %v1365_v59 = vmul.f32 1.442695, %v1344_v56  ;;  %v1334_v61 = vpop.xlane.xlu0 %1333 }
 0x33a   : > { %v1328_v4 = vpop.xlane.xlu1 %1327  ;;  %1389 = vadd.xlane.f32.xlu0 %v3701_v57  ;;  %v3705_v6 = vpop.eup %3138  ;;  %v1352_v20 = vsub.f32 %v3630_v8, %v1334_v61 }
 0x33b   : > { %3144 = vpow2.f32 %v1365_v59  ;;  %v1349_v58 = vsub.f32 %v3603_v62, %v1328_v4  ;;  %v357_v4 = vld [vmem:[%s4450_s2 + $0xa8] sm:$0xff] }
 0x33c   : > { %3146 = vpow2.f32 %v1377_v63  ;;  %v1381_v30 = vmul.f32 1.442695, %v1352_v20  ;;  %v363_v20 = vld [vmem:[%s4450_s2 + $0xd8] sm:$0xff] }
 0x33d   : > { %v3707_v2 = vpop.eup %3140  ;;  %v1375_v9 = vmul.f32 1.442695, %v1349_v58  ;;  %v1338_v60 = vpop.xlane.xlu0 %1337 }
 0x33e   : > { %v1324_v10 = vpop.xlane.xlu1 %1323  ;;  %1399 = vadd.xlane.f32.xlu1 %v3707_v2  ;;  %1401 = vadd.xlane.f32.xlu0 %v3705_v6  ;;  %v1354_v62 = vsub.f32 %v3628_v7, %v1338_v60  ;;  %v356_v60 = vld [vmem:[%s4450_s2 + $0xa0] sm:$0xff] }
 0x33f   : > { %3148 = vpow2.f32 %v1375_v9  ;;  %v1347_v11 = vsub.f32 %v3609_v1, %v1324_v10  ;;  %v3721_v1 = vpop.f32.mrb[40].mxu0  ;;  %v359_v10 = vld [vmem:[%s4450_s2 + $0xb8] sm:$0xff] }
 0x340   : > { %v1385_v21 = vmul.f32 1.442695, %v1354_v62  ;;  %v980_v23 = vpop.f32.mrb[41].mxu0  ;;  %v361_v62 = vld [vmem:[%s4450_s2 + $0xc8] sm:$0xff] }
 0x341   : > { %v3712_v12 = vpop.eup %3142  ;;  %v1371_v13 = vmul.f32 1.442695, %v1347_v11  ;;  %v3726_v26 = vpop.f32.mrb[42].mxu0  ;;  %v365_v23 = vld [vmem:[%s4450_s2 + $0xe8] sm:$0xff] }
 0x342   : > { %v1326_v14 = vpop.xlane.xlu1 %1325  ;;  %1395 = vadd.xlane.f32.xlu1 %v3712_v12  ;;  %v983_v29 = vpop.f32.mrb[43].mxu0 }
 0x343   : > { %3150 = vpow2.f32 %v1371_v13  ;;  %v1348_v15 = vsub.f32 %v3614_v3, %v1326_v14  ;;  %v3736_v35 = vpop.f32.mrb[44].mxu0  ;;  %v362_v29 = vld [vmem:[%s4450_s2 + $0xd0] sm:$0xff] }
 0x344   : > { %v988_v38 = vpop.f32.mrb[45].mxu0 }
 0x345   : > { %v3717_v17 = vpop.eup %3144  ;;  %v1373_v19 = vmul.f32 1.442695, %v1348_v15  ;;  %v3740_v39 = vpop.f32.mrb[46].mxu0  ;;  %v358_v15 = vld [vmem:[%s4450_s2 + $0xb0] sm:$0xff] }
 0x346   : > { %v1336_v22 = vpop.xlane.xlu1 %1335  ;;  %1397 = vadd.xlane.f32.xlu0 %v3717_v17  ;;  %v3724_v25 = vpop.eup %3146  ;;  %v366_v38 = vld [vmem:[%s4450_s2 + $0xf0] sm:$0xff] }
 0x347   : > { %3152 = vpow2.f32 %v1373_v19  ;;  %v1353_v7 = vsub.f32 %v3620_v5, %v1336_v22  ;;  %v472_v5 = vpop.permute.xlu0 %471  ;;  %v991_v41 = vpop.f32.mrb[47].mxu0 }
 0x348   : > { %3154 = vpow2.f32 %v1385_v21  ;;  %v966_v36 = vadd.f32 %v3662_v18, %v472_v5  ;;  %v3754_v46 = vpop.f32.mrb[48].mxu0  ;;  %v360_v21 = vld [vmem:[%s4450_s2 + $0xc0] sm:$0xff]  ;;  %v371_v41 = vld [vmem:[%s4450_s2 + $0x118] sm:$0xff] }
 0x349   : > { %v3728_v3 = vpop.eup %3148  ;;  %v1383_v28 = vmul.f32 1.442695, %v1353_v7  ;;  %v996_v49 = vpop.f32.mrb[49].mxu0  ;;  %v364_v5 = vld [vmem:[%s4450_s2 + $0xe0] sm:$0xff] }
 0x34a   : > { %1407 = vadd.xlane.f32.xlu1 %v3728_v3  ;;  %v1332_v8 = vpop.xlane.xlu1 %1331  ;;  %1409 = vadd.xlane.f32.xlu0 %v3724_v25 }
 0x34b   : > { %3156 = vpow2.f32 %v1383_v28  ;;  %v1351_v31 = vsub.f32 %v3626_v0, %v1332_v8  ;;  %v3277_v8 = vmov 0.0  }
 0x34c   : > { %3158 = vpow2.f32 %v1381_v30  ;;  %1169 = vst [vmem:[#allocation4] sm:$0x1] %v3277_v8 }
 0x34d   : > { %v3733_v32 = vpop.eup %3150  ;;  %v1379_v33 = vmul.f32 1.442695, %v1351_v31  ;;  %v367_v31 = vld [vmem:[%s4450_s2 + $0xf8] sm:$0xff] }
 0x34e   : > { %1403 = vadd.xlane.f32.xlu1 %v3733_v32  ;;  %v467_v34 = vpop.permute.xlu1 %466 }
 0x34f   : > { %3160 = vpow2.f32 %v1379_v33  ;;  %v963_v37 = vadd.f32 %v3660_v16, %v467_v34 }
 0x351   : > { %v3742_v40 = vpop.eup %3152  ;;  %v1097_v0 = vpack.c.bf16 %v966_v36, %v963_v37  ;;  %v369_v36 = vld [vmem:[%s4450_s2 + $0x108] sm:$0xff] }
 0x352   : > { %v477_v43 = vpop.permute.xlu1 %476  ;;  %1405 = vadd.xlane.f32.xlu0 %v3742_v40  ;;  %v3748_v45 = vpop.eup %3154 }
 0x353   : > { %v3746_v44 = vadd.f32 %v3676_v24, %v477_v43  ;;  %2917 = vmatprep.mubr.bf16.mxu1 %v1097_v0  ;;  %v3761_v24 = vpop.f32.mrb[50].mxu0  ;;  %v368_v43 = vld [vmem:[%s4450_s2 + $0x100] sm:$0xff] }
 0x354   : > { %v999_v54 = vpop.f32.mrb[51].mxu0 }
 0x355   : > { %v3750_v18 = vpop.eup %3156  ;;  %v3769_v55 = vpop.f32.mrb[52].mxu0  ;;  %v373_v54 = vld [vmem:[%s4450_s2 + $0x128] sm:$0xff] }
 0x356   : > { %1415 = vadd.xlane.f32.xlu1 %v3750_v18  ;;  %v482_v16 = vpop.permute.xlu1 %481  ;;  %1417 = vadd.xlane.f32.xlu0 %v3748_v45  ;;  %v3759_v50 = vpop.eup %3158 }
 0x357   : > { %v3757_v48 = vadd.f32 %v3681_v27, %v482_v16  ;;  %v1004_v56 = vpop.f32.mrb[53].mxu0 }
 0x358   : > { %v3771_v27 = vpop.f32.mrb[54].mxu0 }
 0x359   : > { %v3763_v51 = vpop.eup %3160  ;;  %v1098_v53 = vpack.c.bf16 %v3757_v48, %v3746_v44  ;;  %v1007_v59 = vpop.f32.mrb[55].mxu0 }
 0x35a   : > { %1411 = vadd.xlane.f32.xlu1 %v3763_v51  ;;  %1413 = vadd.xlane.f32.xlu0 %v3759_v50  ;;  %v3773_v61 = vpop.f32.mrb[56].mxu0  ;;  %v370_v59 = vld [vmem:[%s4450_s2 + $0x110] sm:$0xff] }
 0x35b   : > { %v1012_v63 = vpop.f32.mrb[57].mxu0 }
 0x35c   : > { %v3778_v58 = vpop.f32.mrb[58].mxu0 }
 0x35d   : > { %v1015_v9 = vpop.f32.mrb[59].mxu0 }
 0x35e   : > { %v3786_v11 = vpop.f32.mrb[60].mxu0  ;;  %v372_v9 = vld [vmem:[%s4450_s2 + $0x120] sm:$0xff] }
 0x35f   : > { %v1020_v13 = vpop.f32.mrb[61].mxu0 }
 0x360   : > { %v3791_v14 = vpop.f32.mrb[62].mxu0  ;;  %v377_v13 = vld [vmem:[%s4450_s2 + $0x148] sm:$0xff] }
 0x361   : > { %v1023_v19 = vpop.f32.mrb[63].mxu0 }
 0x362   : > { %v3802_v22 = vpop.f32.mrb[64].mxu0 }
 0x363   : > { %v1028_v7 = vpop.f32.mrb[65].mxu0 }
 0x364   : > { %v3807_v28 = vpop.f32.mrb[66].mxu0  ;;  %v379_v7 = vld [vmem:[%s4450_s2 + $0x158] sm:$0xff] }
 0x365   : > { %v1031_v30 = vpop.f32.mrb[67].mxu0 }
 0x366   : > { %v3818_v33 = vpop.f32.mrb[68].mxu0 }
 0x367   : > { %v1036_v34 = vpop.f32.mrb[69].mxu0 }
 0x368   : > { %v3823_v37 = vpop.f32.mrb[70].mxu0 }
 0x369   : > { %v1039_v0 = vpop.f32.mrb[71].mxu0 }
 0x36a   : > { %v3834_v16 = vpop.f32.mrb[72].mxu0 }
 0x36b   : > { %491 = vperm.xlu1 %3009, %v357_v4   ;;  %v1044_v49 = vpop.f32.mrb[73].mxu0  ;;  %v375_v4 = vld [vmem:[%s4450_s2 + $0x138] sm:$0xff] }
 0x36c   : > { %v3839_v56 = vpop.f32.mrb[74].mxu0 }
 0x36d   : > { %v1047_v63 = vpop.f32.mrb[75].mxu0 }
 0x36f   : > { %501 = vperm.xlu1 %3009, %v359_v10   ;;  %v3850_v10 = vpop.f32.mrb[76].mxu0 }
 0x370   : > { %486 = vperm.xlu0 %3008, %v356_v60   ;;  %v1052_v60 = vpop.f32.mrb[77].mxu0 }
 0x373   : > { %511 = vperm.xlu1 %3009, %v361_v62   ;;  %v3855_v62 = vpop.f32.mrb[78].mxu0 }
 0x374   : > { %496 = vperm.xlu0 %3008, %v358_v15   ;;  %v374_v15 = vld [vmem:[%s4450_s2 + $0x130] sm:$0xff]  ;;  %v1055_v19 = vpop.f32.mrb[79].mxu0 }
 0x375   : > { %v1932_v19 = vld [vmem:[%s4452_s4 + $0x18] sm:$0xff] }
 0x377   : > { %521 = vperm.xlu1 %3009, %v363_v20   ;;  %v3860_v20 = vpop.f32.mrb[80].mxu0 }
 0x378   : > { %506 = vperm.xlu0 %3008, %v360_v21   ;;  %v1060_v21 = vpop.f32.mrb[81].mxu0 }
 0x379   : > { %v1929_v21 = vld [vmem:[%s4452_s4] sm:$0xff] }
 0x37b   : > { %531 = vperm.xlu1 %3009, %v365_v23   ;;  %v3865_v23 = vpop.f32.mrb[82].mxu0 }
 0x37c   : > { %516 = vperm.xlu0 %3008, %v362_v29   ;;  %v376_v29 = vld [vmem:[%s4450_s2 + $0x140] sm:$0xff]  ;;  %v1063_v30 = vpop.f32.mrb[83].mxu0 }
 0x37d   : > { %v3870_v8 = vpop.f32.mrb[84].mxu0  ;;  %v1936_v30 = vld [vmem:[%s4452_s4 + $0x38] sm:$0xff] }
 0x37f   : > { %541 = vperm.xlu1 %3009, %v367_v31   ;;  %v1068_v31 = vpop.f32.mrb[85].mxu0 }
 0x380   : > { %526 = vperm.xlu0 %3008, %v364_v5   ;;  %v381_v5 = vld [vmem:[%s4450_s2 + $0x168] sm:$0xff]  ;;  %v3875_v34 = vpop.f32.mrb[86].mxu0  ;;  %v1933_v31 = vld [vmem:[%s4452_s4 + $0x20] sm:$0xff] }
 0x383   : > { %551 = vperm.xlu1 %3009, %v369_v36   ;;  %v378_v36 = vld [vmem:[%s4450_s2 + $0x150] sm:$0xff] }
 0x384   : > { %536 = vperm.xlu0 %3008, %v366_v38   ;;  %v1071_v38 = vpop.f32.mrb[87].mxu0 }
 0x385   : > { %v3880_v0 = vpop.f32.mrb[88].mxu0  ;;  %v1940_v38 = vld [vmem:[%s4452_s4 + $0x58] sm:$0xff] }
 0x387   : > { %561 = vperm.xlu1 %3009, %v371_v41   ;;  %v1076_v41 = vpop.f32.mrb[89].mxu0 }
 0x388   : > { %546 = vperm.xlu0 %3008, %v368_v43   ;;  %v383_v43 = vld [vmem:[%s4450_s2 + $0x178] sm:$0xff]  ;;  %v3885_v49 = vpop.f32.mrb[90].mxu0  ;;  %v1937_v41 = vld [vmem:[%s4452_s4 + $0x40] sm:$0xff] }
 0x38b   : > { %571 = vperm.xlu1 %3009, %v373_v54   ;;  %v380_v54 = vld [vmem:[%s4450_s2 + $0x160] sm:$0xff] }
 0x38c   : > { %556 = vperm.xlu0 %3008, %v370_v59   ;;  %v1079_v59 = vpop.f32.mrb[91].mxu0 }
 0x38d   : > { %v3890_v63 = vpop.f32.mrb[92].mxu0 }
 0x38f   : > { %581 = vperm.xlu1 %3009, %v375_v4   ;;  %v1084_v4 = vpop.f32.mrb[93].mxu0 }
 0x390   : > { %566 = vperm.xlu0 %3008, %v372_v9   ;;  %v1930_v9 = vld [vmem:[%s4452_s4 + $0x8] sm:$0xff]  ;;  %v3895_v60 = vpop.f32.mrb[94].mxu0  ;;  %v1944_v4 = vld [vmem:[%s4452_s4 + $0x78] sm:$0xff] }
 0x393   : > { %591 = vperm.xlu1 %3009, %v377_v13   ;;  %v382_v13 = vld [vmem:[%s4450_s2 + $0x170] sm:$0xff] }
 0x394   : > { %576 = vperm.xlu0 %3008, %v374_v15   ;;  %v1087_v15 = vpop.f32.mrb[95].mxu0 }
 0x395   : > { %v1943_v15 = vld [vmem:[%s4452_s4 + $0x70] sm:$0xff] }
 0x397   : > { %601 = vperm.xlu1 %3009, %v379_v7   ;;  %v1934_v7 = vld [vmem:[%s4452_s4 + $0x28] sm:$0xff] }
 0x398   : > { %586 = vperm.xlu0 %3008, %v376_v29   ;;  %v1931_v29 = vld [vmem:[%s4452_s4 + $0x10] sm:$0xff] }
 0x39b   : > { %611 = vperm.xlu1 %3009, %v381_v5   ;;  %v1938_v5 = vld [vmem:[%s4452_s4 + $0x48] sm:$0xff] }
 0x39c   : > { %596 = vperm.xlu0 %3008, %v378_v36   ;;  %v1935_v36 = vld [vmem:[%s4452_s4 + $0x30] sm:$0xff] }
 0x39f   : > { %621 = vperm.xlu1 %3009, %v383_v43   ;;  %v1942_v43 = vld [vmem:[%s4452_s4 + $0x68] sm:$0xff] }
 0x3a0   : > { %606 = vperm.xlu0 %3008, %v380_v54   ;;  %v1939_v54 = vld [vmem:[%s4452_s4 + $0x50] sm:$0xff] }
 0x3a3   : > { %1968 = vperm.xlu1 %3009, %v1930_v9   ;;  %v1941_v9 = vld [vmem:[%s4452_s4 + $0x60] sm:$0xff] }
 0x3a4   : > { %616 = vperm.xlu0 %3008, %v382_v13   ;;  %v1946_v13 = vld [vmem:[%s4452_s4 + $0x88] sm:$0xff] }
 0x3a7   : > { %1978 = vperm.xlu1 %3009, %v1932_v19  }
 0x3a8   : > { %1963 = vperm.xlu0 %3008, %v1929_v21  }
 0x3ab   : > { %1988 = vperm.xlu1 %3009, %v1934_v7   ;;  %v1948_v7 = vld [vmem:[%s4452_s4 + $0x98] sm:$0xff] }
 0x3ac   : > { %1973 = vperm.xlu0 %3008, %v1931_v29   ;;  %v1945_v29 = vld [vmem:[%s4452_s4 + $0x80] sm:$0xff] }
 0x3af   : > { %1998 = vperm.xlu1 %3009, %v1936_v30  }
 0x3b0   : > { %1983 = vperm.xlu0 %3008, %v1933_v31   ;;  %v1950_v31 = vld [vmem:[%s4452_s4 + $0xa8] sm:$0xff] }
 0x3b3   : > { %2008 = vperm.xlu1 %3009, %v1938_v5   ;;  %v1947_v5 = vld [vmem:[%s4452_s4 + $0x90] sm:$0xff] }
 0x3b4   : > { %1993 = vperm.xlu0 %3008, %v1935_v36  }
 0x3b7   : > { %2018 = vperm.xlu1 %3009, %v1940_v38   ;;  %v1952_v38 = vld [vmem:[%s4452_s4 + $0xb8] sm:$0xff] }
 0x3b8   : > { %2003 = vperm.xlu0 %3008, %v1937_v41   ;;  %v1949_v41 = vld [vmem:[%s4452_s4 + $0xa0] sm:$0xff] }
 0x3bb   : > { %2028 = vperm.xlu1 %3009, %v1942_v43   ;;  %v1392_v59 = vpop.xlane.xlu1 %1391 }
 0x3bc   : > { %2013 = vperm.xlu0 %3008, %v1939_v54  }
 0x3bf   : > { %2038 = vperm.xlu1 %3009, %v1944_v4   ;;  %v1388_v19 = vpop.xlane.xlu1 %1387 }
 0x3c0   : > { %2023 = vperm.xlu0 %3008, %v1941_v9   ;;  %3162 = vrcp.f32 %v1388_v19  ;;  %v1954_v9 = vld [vmem:[%s4452_s4 + $0xc8] sm:$0xff] }
 0x3c3   : > { %2048 = vperm.xlu1 %3009, %v1946_v13   ;;  %v1394_v21 = vpop.xlane.xlu0 %1393 }
 0x3c4   : > { %2033 = vperm.xlu0 %3008, %v1943_v15   ;;  %3164 = vrcp.f32 %v1394_v21  ;;  %v1951_v15 = vld [vmem:[%s4452_s4 + $0xb0] sm:$0xff] }
 0x3c5   : > { %3166 = vrcp.f32 %v1392_v59 }
 0x3c7   : > { %2058 = vperm.xlu1 %3009, %v1948_v7   ;;  %v1390_v30 = vpop.xlane.xlu0 %1389 }
 0x3c8   : > { %3168 = vrcp.f32 %v1390_v30  ;;  %2043 = vperm.xlu0 %3008, %v1945_v29  }
 0x3ca   : > { %v3163_v43 = vpop.eup %3162 }
 0x3cb   : > { %2068 = vperm.xlu1 %3009, %v1950_v31   ;;  %v1400_v36 = vpop.xlane.xlu1 %1399  ;;  %v1402_v54 = vpop.xlane.xlu0 %1401  ;;  %v1435_v7 = vmul.f32 %v3163_v43, %v3692_v47  ;;  %v1956_v31 = vld [vmem:[%s4452_s4 + $0xd8] sm:$0xff] }
 0x3cc   : > { %2053 = vperm.xlu0 %3008, %v1947_v5  }
 0x3ce   : > { %v3165_v4 = vpop.eup %3164 }
 0x3cf   : > { %2078 = vperm.xlu1 %3009, %v1952_v38   ;;  %v1396_v59 = vpop.xlane.xlu1 %1395  ;;  %v3167_v13 = vpop.eup %3166  ;;  %v1438_v30 = vmul.f32 %v3165_v4, %v3696_v52  ;;  %v1953_v38 = vld [vmem:[%s4452_s4 + $0xc0] sm:$0xff]  ;;  %v1958_v52 = vld [vmem:[%s4452_s4 + $0xe8] sm:$0xff] }
 0x3d0   : > { %3170 = vrcp.f32 %v1396_v59  ;;  %2063 = vperm.xlu0 %3008, %v1949_v41   ;;  %v1437_v41 = vmul.f32 %v3167_v13, %v3688_v42 }
 0x3d1   : > { %3172 = vrcp.f32 %v1400_v36 }
 0x3d2   : > { %v3169_v19 = vpop.eup %3168  ;;  %3174 = vrcp.f32 %v1402_v54  ;;  %v1955_v54 = vld [vmem:[%s4452_s4 + $0xd0] sm:$0xff] }
 0x3d3   : > { %2088 = vperm.xlu1 %3009, %v1954_v9   ;;  %v1398_v21 = vpop.xlane.xlu0 %1397  ;;  %v1436_v29 = vmul.f32 %v3169_v19, %v3701_v57  ;;  %v1508_v57 = vpack.c.bf16 %v1438_v30, %v1437_v41  ;;  %v1960_v19 = vld [vmem:[%s4452_s4 + $0xf8] sm:$0xff] }
 0x3d4   : > { %3176 = vrcp.f32 %v1398_v21  ;;  %2073 = vperm.xlu0 %3008, %v1951_v15  }
 0x3d5   : > { %v1452_v5 = vadd.f32 %v1436_v29, %v1435_v7  ;;  %v1507_v36 = vpack.c.bf16 %v1436_v29, %v1435_v7  ;;  %v1957_v7 = vld [vmem:[%s4452_s4 + $0xe0] sm:$0xff] }
 0x3d7   : > { %2098 = vperm.xlu1 %3009, %v1956_v31   ;;  %v1408_v47 = vpop.xlane.xlu1 %1407  ;;  %2901 = vmatprep.subr.bf16.mxu1 %v1507_v36  ;;  %v1453_v43 = vadd.f32 %v1452_v5, %v1437_v41  ;;  %v1410_v9 = vpop.xlane.xlu0 %1409 }
 0x3d8   : > { %2083 = vperm.xlu0 %3008, %v1953_v38   ;;  %2902 = vmatpush3.bf16.msra.mxu1 %v1507_v36 }
 0x3d9   : > { %2903 = vmatprep.subr.bf16.mxu1 %v1508_v57  ;;  %v1454_v21 = vadd.f32 %v1453_v43, %v1438_v30  ;;  %v1959_v30 = vld [vmem:[%s4452_s4 + $0xf0] sm:$0xff] }
 0x3da   : > { %v3171_v59 = vpop.eup %3170 }
 0x3db   : > { %v3173_v4 = vpop.eup %3172  ;;  %2108 = vperm.xlu1 %3009, %v1958_v52   ;;  %v1404_v42 = vpop.xlane.xlu1 %1403  ;;  %v1439_v13 = vmul.f32 %v3171_v59, %v3712_v12 }
 0x3dc   : > { %v3175_v15 = vpop.eup %3174  ;;  %3178 = vrcp.f32 %v1404_v42  ;;  %2093 = vperm.xlu0 %3008, %v1955_v54   ;;  %2904 = vmatpush3.bf16.msra.mxu1 %v1508_v57  ;;  %v1441_v36 = vmul.f32 %v3173_v4, %v3707_v2 }
 0x3dd   : > { %3180 = vrcp.f32 %v1408_v47  ;;  %v1455_v5 = vadd.f32 %v1454_v21, %v1439_v13  ;;  %v1442_v38 = vmul.f32 %v3175_v15, %v3705_v6 }
 0x3de   : > { %v3177_v29 = vpop.eup %3176  ;;  %3182 = vrcp.f32 %v1410_v9 }
 0x3df   : > { %2118 = vperm.xlu1 %3009, %v1960_v19   ;;  %v1406_v31 = vpop.xlane.xlu0 %1405  ;;  %v1440_v12 = vmul.f32 %v3177_v29, %v3717_v17  ;;  %v1510_v43 = vpack.c.bf16 %v1442_v38, %v1441_v36 }
 0x3e0   : > { %3184 = vrcp.f32 %v1406_v31  ;;  %2103 = vperm.xlu0 %3008, %v1957_v7  }
 0x3e1   : > { %v1456_v41 = vadd.f32 %v1455_v5, %v1440_v12  ;;  %v1509_v47 = vpack.c.bf16 %v1440_v12, %v1439_v13 }
 0x3e3   : > { %v1416_v57 = vpop.xlane.xlu1 %1415  ;;  %2905 = vmatprep.subr.bf16.mxu1 %v1509_v47  ;;  %v1418_v52 = vpop.xlane.xlu0 %1417  ;;  %v1457_v17 = vadd.f32 %v1456_v41, %v1441_v36 }
 0x3e4   : > { %2113 = vperm.xlu0 %3008, %v1959_v30   ;;  %2906 = vmatpush3.bf16.msra.mxu1 %v1509_v47  ;;  %3186 = vrcp.f32 %v1416_v57 }
 0x3e5   : > { %2907 = vmatprep.subr.bf16.mxu1 %v1510_v43  ;;  %3188 = vrcp.f32 %v1418_v52  ;;  %v1458_v42 = vadd.f32 %v1457_v17, %v1442_v38 }
 0x3e6   : > { %v3179_v54 = vpop.eup %3178 }
 0x3e7   : > { %v3181_v2 = vpop.eup %3180  ;;  %v1412_v6 = vpop.xlane.xlu1 %1411  ;;  %v1443_v4 = vmul.f32 %v3179_v54, %v3733_v32 }
 0x3e8   : > { %v1414_v59 = vpop.xlane.xlu0 %1413  ;;  %v3183_v9 = vpop.eup %3182  ;;  %3190 = vrcp.f32 %v1412_v6  ;;  %2908 = vmatpush3.bf16.msra.mxu1 %v1510_v43  ;;  %v1445_v7 = vmul.f32 %v3181_v2, %v3728_v3 }
 0x3e9   : > { %3192 = vrcp.f32 %v1414_v59  ;;  %v1459_v21 = vadd.f32 %v1458_v42, %v1443_v4  ;;  %v1446_v29 = vmul.f32 %v3183_v9, %v3724_v25 }
 0x3ea   : > { %v3185_v13 = vpop.eup %3184 }
 0x3eb   : > { %v492_v15 = vpop.permute.xlu1 %491  ;;  %v1444_v19 = vmul.f32 %v3185_v13, %v3742_v40  ;;  %v1512_v41 = vpack.c.bf16 %v1446_v29, %v1445_v7 }
 0x3ec   : > { %v982_v38 = vadd.f32 %v3726_v26, %v492_v15 }
 0x3ed   : > { %v1460_v31 = vadd.f32 %v1459_v21, %v1444_v19  ;;  %v1511_v12 = vpack.c.bf16 %v1444_v19, %v1443_v4 }
 0x3ee   : > { %v3187_v47 = vpop.eup %3186 }
 0x3ef   : > { %v502_v5 = vpop.permute.xlu1 %501  ;;  %2909 = vmatprep.subr.bf16.mxu1 %v1511_v12  ;;  %v487_v36 = vpop.permute.xlu0 %486  ;;  %v1461_v32 = vadd.f32 %v1460_v31, %v1445_v7  ;;  %v1449_v2 = vmul.f32 %v3187_v47, %v3750_v18 }
 0x3f0   : > { %v979_v30 = vadd.f32 %v3721_v1, %v487_v36  ;;  %2910 = vmatpush3.bf16.msra.mxu1 %v1511_v12  ;;  %v3189_v57 = vpop.eup %3188  ;;  %v990_v6 = vadd.f32 %v3740_v39, %v502_v5 }
 0x3f1   : > { %2911 = vmatprep.subr.bf16.mxu1 %v1512_v41  ;;  %v1462_v43 = vadd.f32 %v1461_v32, %v1446_v29  ;;  %v1450_v26 = vmul.f32 %v3189_v57, %v3748_v45 }
 0x3f2   : > { %v3191_v40 = vpop.eup %3190  ;;  %v1099_v52 = vpack.c.bf16 %v982_v38, %v979_v30 }
 0x3f3   : > { %v3193_v3 = vpop.eup %3192  ;;  %v512_v25 = vpop.permute.xlu1 %511  ;;  %v1447_v54 = vmul.f32 %v3191_v40, %v3763_v51  ;;  %v1514_v51 = vpack.c.bf16 %v1450_v26, %v1449_v2 }
 0x3f4   : > { %v497_v17 = vpop.permute.xlu0 %496  ;;  %2912 = vmatpush3.bf16.msra.mxu1 %v1512_v41  ;;  %v1448_v1 = vmul.f32 %v3193_v3, %v3759_v50  ;;  %v998_v21 = vadd.f32 %v3761_v24, %v512_v25 }
 0x3f5   : > { %v987_v59 = vadd.f32 %v3736_v35, %v497_v17  ;;  %v1463_v4 = vadd.f32 %v1462_v43, %v1447_v54  ;;  %v1451_v43 = vld [vmem:[#allocation4] sm:$0x1] }
 0x3f6   : > { %v1513_v42 = vpack.c.bf16 %v1448_v1, %v1447_v54 }
 0x3f7   : > { %v1100_v9 = vpack.c.bf16 %v990_v6, %v987_v59  ;;  %v522_v13 = vpop.permute.xlu1 %521  ;;  %v1464_v15 = vadd.f32 %v1463_v4, %v1448_v1 }
 0x3f8   : > { %v507_v19 = vpop.permute.xlu0 %506  ;;  %2913 = vmatprep.subr.bf16.mxu1 %v1513_v42  ;;  %v1006_v45 = vadd.f32 %v3771_v27, %v522_v13 }
 0x3f9   : > { %v995_v18 = vadd.f32 %v3754_v46, %v507_v19  ;;  %2914 = vmatpush3.bf16.msra.mxu1 %v1513_v42  ;;  %v1465_v39 = vadd.f32 %v1464_v15, %v1449_v2 }
 0x3fa   : > { %2915 = vmatprep.subr.bf16.mxu1 %v1514_v51 }
 0x3fb   : > { %v1101_v35 = vpack.c.bf16 %v998_v21, %v995_v18  ;;  %v1466_v7 = vadd.f32 %v1465_v39, %v1450_v26  ;;  %v532_v50 = vpop.permute.xlu1 %531 }
 0x3fc   : > { %v517_v29 = vpop.permute.xlu0 %516  ;;  %v1014_v46 = vadd.f32 %v3778_v58, %v532_v50 }
 0x3fd   : > { %v1003_v31 = vadd.f32 %v3769_v55, %v517_v29  ;;  %v1467_v12 = vrot.slane %v1466_v7, 4  ;;  %2916 = vmatpush3.bf16.msra.mxu1 %v1514_v51 }
 0x3ff   : > { %v1102_v5 = vpack.c.bf16 %v1006_v45, %v1003_v31  ;;  %v1468_v36 = vadd.f32 %v1467_v12, %v1466_v7  ;;  %v542_v24 = vpop.permute.xlu1 %541 }
 0x400   : > { %v527_v32 = vpop.permute.xlu0 %526  ;;  %2918 = vmatmul.mubr.bf16.vlgmr.msra.gmra.mrb[16].mxu1 %v1098_v53  ;;  %v1022_v57 = vadd.f32 %v3791_v14, %v542_v24 }
 0x401   : > { %v1011_v41 = vadd.f32 %v3773_v61, %v527_v32  ;;  %v1469_v47 = vrot.slane %v1468_v36, 2  ;;  %2921 = vmatprep.mubr.bf16.mxu1 %v1099_v52 }
 0x403   : > { %v1103_v38 = vpack.c.bf16 %v1014_v46, %v1011_v41  ;;  %v1470_v27 = vadd.f32 %v1469_v47, %v1468_v36  ;;  %v552_v30 = vpop.permute.xlu1 %551  ;;  %v4047_v46 = vld [vmem:[%s3377_s13 + $0x10] sm:$0xff] }
 0x404   : > { %v537_v55 = vpop.permute.xlu0 %536  ;;  %v1030_v44 = vadd.f32 %v3807_v28, %v552_v30 }
 0x405   : > { %v1019_v40 = vadd.f32 %v3786_v11, %v537_v55  ;;  %v1471_v3 = vrot.slane %v1470_v27, 1 }
 0x407   : > { %v1104_v25 = vpack.c.bf16 %v1022_v57, %v1019_v40  ;;  %v1472_v58 = vadd.f32 %v1471_v3, %v1470_v27  ;;  %v562_v17 = vpop.permute.xlu1 %561  ;;  %v4054_v27 = vld [vmem:[%s3377_s13] sm:$0xff]  ;;  %v4058_v57 = vld [vmem:[%s3377_s13 + $0x8] sm:$0xff] }
 0x408   : > { %v547_v54 = vpop.permute.xlu0 %546  ;;  %2922 = vmatmul.mubr.bf16.gmra.mrb[20].mxu1 %v1100_v9  ;;  %v1038_v14 = vadd.f32 %v3823_v37, %v562_v17 }
 0x409   : > { %v1027_v48 = vadd.f32 %v3802_v22, %v547_v54  ;;  %v1473_v53 = vadd.f32 %v1472_v58, %v1451_v43  ;;  %2925 = vmatprep.mubr.bf16.mxu1 %v1101_v35 }
 0x40b   : > { %v1105_v61 = vpack.c.bf16 %v1030_v44, %v1027_v48  ;;  %1474 = vst [vmem:[#allocation4] sm:$0x1] %v1473_v53  ;;  %v572_v52 = vpop.permute.xlu1 %571 }
 0x40c   : > { %v557_v2 = vpop.permute.xlu0 %556  ;;  %v1046_v26 = vadd.f32 %v3839_v56, %v572_v52 }
 0x40d   : > { %v1035_v11 = vadd.f32 %v3818_v33, %v557_v2 }
 0x40f   : > { %v1106_v6 = vpack.c.bf16 %v1038_v14, %v1035_v11  ;;  %v582_v59 = vpop.permute.xlu1 %581  ;;  %v4075_v14 = vld [vmem:[%s3377_s13 + $0x38] sm:$0xff]  ;;  %v4078_v11 = vld [vmem:[%s3377_s13 + $0x20] sm:$0xff] }
 0x410   : > { %v567_v1 = vpop.permute.xlu0 %566  ;;  %2926 = vmatmul.mubr.bf16.gmra.mrb[24].mxu1 %v1102_v5  ;;  %v1054_v42 = vadd.f32 %v3855_v62, %v582_v59 }
 0x411   : > { %v1043_v28 = vadd.f32 %v3834_v16, %v567_v1  ;;  %2929 = vmatprep.mubr.bf16.mxu1 %v1103_v38  ;;  %v4051_v38 = vld [vmem:[%s3377_s13 + $0x18] sm:$0xff]  ;;  %v4082_v1 = vld [vmem:[%s3377_s13 + $0x28] sm:$0xff] }
 0x413   : > { %v1107_v22 = vpack.c.bf16 %v1046_v26, %v1043_v28  ;;  %v592_v4 = vpop.permute.xlu1 %591 }
 0x414   : > { %v577_v9 = vpop.permute.xlu0 %576  ;;  %v1062_v33 = vadd.f32 %v3865_v23, %v592_v4 }
 0x415   : > { %v1051_v13 = vadd.f32 %v3850_v10, %v577_v9 }
 0x417   : > { %v1108_v15 = vpack.c.bf16 %v1054_v42, %v1051_v13  ;;  %v602_v37 = vpop.permute.xlu1 %601 }
 0x418   : > { %v587_v19 = vpop.permute.xlu0 %586  ;;  %2930 = vmatmul.mubr.bf16.gmra.mrb[28].mxu1 %v1104_v25  ;;  %v1070_v51 = vadd.f32 %v3875_v34, %v602_v37  ;;  %v1775_v34 = vld [vmem:[#allocation4] sm:$0x1] }
 0x419   : > { %v1059_v21 = vadd.f32 %v3860_v20, %v587_v19  ;;  %2933 = vmatprep.mubr.bf16.mxu1 %v1105_v61  ;;  %v4071_v61 = vld [vmem:[%s3377_s13 + $0x30] sm:$0xff] }
 0x41b   : > { %v1109_v56 = vpack.c.bf16 %v1062_v33, %v1059_v21  ;;  %v612_v18 = vpop.permute.xlu1 %611  ;;  %v4095_v33 = vld [vmem:[%s3377_s13 + $0x50] sm:$0xff] }
 0x41c   : > { %v597_v16 = vpop.permute.xlu0 %596  ;;  %v1078_v10 = vadd.f32 %v3885_v49, %v612_v18  ;;  %v1812_v49 = vlaneseq  ;;  %v4099_v18 = vld [vmem:[%s3377_s13 + $0x58] sm:$0xff] }
 0x41d   : > { %v1067_v39 = vadd.f32 %v3870_v8, %v597_v16  ;;  %v3084_v8 = vld [vmem:[%s4451_s3 + $0x4] ss:$8 sps:$4 sm:$0xff]  }
 0x41e   : > { %v4102_v16 = vld [vmem:[%s3377_s13 + $0x40] sm:$0xff] }
 0x41f   : > { %v1110_v35 = vpack.c.bf16 %v1070_v51, %v1067_v39  ;;  %v622_v50 = vpop.permute.xlu1 %621 }
 0x420   : > { %v607_v62 = vpop.permute.xlu0 %606  ;;  %2934 = vmatmul.mubr.bf16.gmra.mrb[32].mxu1 %v1106_v6  ;;  %v1086_v20 = vadd.f32 %v3895_v60, %v622_v50 }
 0x421   : > { %v1075_v7 = vadd.f32 %v3880_v0, %v607_v62  ;;  %2937 = vmatprep.mubr.bf16.mxu1 %v1107_v22  ;;  %v1776_v0 = vadd.f32 1e-09, %v1775_v34  ;;  %v4119_v34 = vld [vmem:[%s3377_s13 + $0x70] sm:$0xff] }
 0x423   : > { %v1111_v23 = vpack.c.bf16 %v1078_v10, %v1075_v7  ;;  %3194 = vrcp.f32 %v1776_v0 }
 0x424   : > { %v617_v29 = vpop.permute.xlu0 %616 }
 0x425   : > { %v1083_v45 = vadd.f32 %v3890_v63, %v617_v29  ;;  %v1813_v63 = vshrl.u32 %v1812_v49, 7 }
 0x427   : > { %v1112_v31 = vpack.c.bf16 %v1086_v20, %v1083_v45  ;;  %v1814_v60 = vsub.s32 0, %v1813_v63  ;;  %v4123_v63 = vld [vmem:[%s3377_s13 + $0x78] sm:$0xff] }
 0x428   : > { %2938 = vmatmul.mubr.bf16.gmra.mrb[36].mxu1 %v1108_v15 }
 0x429   : > { %2941 = vmatprep.mubr.bf16.mxu1 %v1109_v56 }
 0x42d   : > { %v3195_v12 = vpop.eup %3194 }
 0x42e   : > { %v4043_v5 = vrot.slane %v3195_v12, %v1814_v60  ;;  %v4126_v60 = vld [vmem:[%s3377_s13 + $0x60] sm:$0xff] }
 0x430   : > { %2942 = vmatmul.mubr.bf16.gmra.mrb[40].mxu1 %v1110_v35  ;;  %v4106_v35 = vld [vmem:[%s3377_s13 + $0x48] sm:$0xff] }
 0x431   : > { %2945 = vmatprep.mubr.bf16.mxu1 %v1111_v23 }
 0x438   : > { %2946 = vmatmul.mubr.bf16.gmra.mrb[44].mxu1 %v1112_v31 }
 0x439   : > { %2313 = vmatprep.mubr.bf16.mxu1 %v3084_v8 }
 0x4d3   : > { %v2919_v36 = vpop.f32.mrb[16].mxu1 }
 0x4d4   : > { %v1819_v24 = vmul.f32 %v2919_v36, %v4043_v5  ;;  %v1549_v32 = vpop.f32.mrb[17].mxu1 }
 0x4d5   : > { %v1817_v41 = vmul.f32 %v4043_v5, %v1549_v32  ;;  %v2920_v47 = vpop.f32.mrb[18].mxu1 }
 0x4d6   : > { %v1820_v30 = vmul.f32 %v2920_v47, %v4043_v5  ;;  %v1552_v55 = vpop.f32.mrb[19].mxu1  ;;  %v1883_v3 = vsub.f32 %v4047_v46, %v1819_v24  ;;  %v4130_v24 = vld [vmem:[%s3377_s13 + $0x68] sm:$0xff] }
 0x4d7   : > { %v1818_v40 = vmul.f32 %v4043_v5, %v1552_v55  ;;  %v1881_v25 = vsub.f32 %v4054_v27, %v1817_v41 }
 0x4d8   : > { %v1884_v43 = vsub.f32 %v4051_v38, %v1820_v30 }
 0x4d9   : > { %v1882_v58 = vsub.f32 %v4058_v57, %v1818_v40 }
 0x4da   : > { %v4065_v17 = vpack.c.bf16 %v1884_v43, %v1883_v3 }
 0x4db   : > { %v4067_v54 = vpack.c.bf16 %v1882_v58, %v1881_v25  ;;  %v2923_v44 = vpop.f32.mrb[20].mxu1 }
 0x4dc   : > { %v1823_v48 = vmul.f32 %v2923_v44, %v4043_v5  ;;  %v1565_v53 = vpop.f32.mrb[21].mxu1  ;;  %v4143_v44 = vld [vmem:[%s3377_s13 + $0x90] sm:$0xff] }
 0x4dd   : > { %v1821_v52 = vmul.f32 %v4043_v5, %v1565_v53  ;;  %v2924_v2 = vpop.f32.mrb[22].mxu1 }
 0x4de   : > { %v1824_v6 = vmul.f32 %v2924_v2, %v4043_v5  ;;  %v1568_v59 = vpop.f32.mrb[23].mxu1  ;;  %v1887_v28 = vsub.f32 %v4071_v61, %v1823_v48  ;;  %v4150_v2 = vld [vmem:[%s3377_s13 + $0x80] sm:$0xff] }
 0x4df   : > { %v1822_v26 = vmul.f32 %v4043_v5, %v1568_v59  ;;  %v1885_v4 = vsub.f32 %v4078_v11, %v1821_v52  ;;  %v4147_v52 = vld [vmem:[%s3377_s13 + $0x98] sm:$0xff] }
 0x4e0   : > { %v1888_v22 = vsub.f32 %v4075_v14, %v1824_v6 }
 0x4e1   : > { %v1886_v9 = vsub.f32 %v4082_v1, %v1822_v26  ;;  %v4154_v26 = vld [vmem:[%s3377_s13 + $0x88] sm:$0xff] }
 0x4e2   : > { %v4089_v42 = vpack.c.bf16 %v1888_v22, %v1887_v28 }
 0x4e3   : > { %v4091_v13 = vpack.c.bf16 %v1886_v9, %v1885_v4  ;;  %v2927_v15 = vpop.f32.mrb[24].mxu1 }
 0x4e4   : > { %v1827_v37 = vmul.f32 %v2927_v15, %v4043_v5  ;;  %v1581_v19 = vpop.f32.mrb[25].mxu1 }
 0x4e5   : > { %v1825_v21 = vmul.f32 %v4043_v5, %v1581_v19  ;;  %v2928_v56 = vpop.f32.mrb[26].mxu1 }
 0x4e6   : > { %v1828_v51 = vmul.f32 %v2928_v56, %v4043_v5  ;;  %v1584_v39 = vpop.f32.mrb[27].mxu1  ;;  %v1891_v10 = vsub.f32 %v4095_v33, %v1827_v37 }
 0x4e7   : > { %v1826_v62 = vmul.f32 %v4043_v5, %v1584_v39  ;;  %v1889_v50 = vsub.f32 %v4102_v16, %v1825_v21  ;;  %v4163_v39 = vld [vmem:[%s3377_s13 + $0xb0] sm:$0xff] }
 0x4e8   : > { %v1892_v7 = vsub.f32 %v4099_v18, %v1828_v51 }
 0x4e9   : > { %v1890_v23 = vsub.f32 %v4106_v35, %v1826_v62 }
 0x4ea   : > { %v4113_v29 = vpack.c.bf16 %v1892_v7, %v1891_v10  ;;  %v4167_v7 = vld [vmem:[%s3377_s13 + $0xb8] sm:$0xff] }
 0x4eb   : > { %v4115_v20 = vpack.c.bf16 %v1890_v23, %v1889_v50  ;;  %v2931_v45 = vpop.f32.mrb[28].mxu1  ;;  %v4170_v50 = vld [vmem:[%s3377_s13 + $0xa0] sm:$0xff] }
 0x4ec   : > { %v1831_v31 = vmul.f32 %v2931_v45, %v4043_v5  ;;  %v1597_v8 = vpop.f32.mrb[29].mxu1 }
 0x4ed   : > { %v1829_v0 = vmul.f32 %v4043_v5, %v1597_v8  ;;  %v2932_v49 = vpop.f32.mrb[30].mxu1 }
 0x4ee   : > { %v1832_v12 = vmul.f32 %v2932_v49, %v4043_v5  ;;  %v1600_v36 = vpop.f32.mrb[31].mxu1  ;;  %v1895_v41 = vsub.f32 %v4119_v34, %v1831_v31  ;;  %v4174_v31 = vld [vmem:[%s3377_s13 + $0xa8] sm:$0xff] }
 0x4ef   : > { %v1830_v32 = vmul.f32 %v4043_v5, %v1600_v36  ;;  %v1893_v30 = vsub.f32 %v4126_v60, %v1829_v0 }
 0x4f0   : > { %v1896_v47 = vsub.f32 %v4123_v63, %v1832_v12 }
 0x4f1   : > { %v1894_v55 = vsub.f32 %v4130_v24, %v1830_v32 }
 0x4f2   : > { %v4137_v40 = vpack.c.bf16 %v1896_v47, %v1895_v41 }
 0x4f3   : > { %v4139_v3 = vpack.c.bf16 %v1894_v55, %v1893_v30  ;;  %v2935_v43 = vpop.f32.mrb[32].mxu1  ;;  %v4185_v55 = vld [vmem:[%s3377_s13 + $0xd0] sm:$0xff] }
 0x4f4   : > { %v1835_v25 = vmul.f32 %v2935_v43, %v4043_v5  ;;  %v1613_v58 = vpop.f32.mrb[33].mxu1 }
 0x4f5   : > { %v1833_v48 = vmul.f32 %v4043_v5, %v1613_v58  ;;  %v2936_v53 = vpop.f32.mrb[34].mxu1  ;;  %v4189_v58 = vld [vmem:[%s3377_s13 + $0xd8] sm:$0xff] }
 0x4f6   : > { %v1836_v6 = vmul.f32 %v2936_v53, %v4043_v5  ;;  %v1616_v59 = vpop.f32.mrb[35].mxu1  ;;  %v1899_v22 = vsub.f32 %v4143_v44, %v1835_v25 }
 0x4f7   : > { %v1834_v28 = vmul.f32 %v4043_v5, %v1616_v59  ;;  %v1897_v9 = vsub.f32 %v4150_v2, %v1833_v48  ;;  %v4192_v48 = vld [vmem:[%s3377_s13 + $0xc0] sm:$0xff] }
 0x4f8   : > { %v1900_v4 = vsub.f32 %v4147_v52, %v1836_v6  ;;  %v4196_v6 = vld [vmem:[%s3377_s13 + $0xc8] sm:$0xff] }
 0x4f9   : > { %v1898_v15 = vsub.f32 %v4154_v26, %v1834_v28 }
 0x4fa   : > { %v1922_v37 = vpack.c.bf16 %v1900_v4, %v1899_v22 }
 0x4fb   : > { %v2939_v19 = vpop.f32.mrb[36].mxu1  ;;  %v1921_v21 = vpack.c.bf16 %v1898_v15, %v1897_v9 }
 0x4fc   : > { %v1839_v56 = vmul.f32 %v2939_v19, %v4043_v5  ;;  %v1629_v51 = vpop.f32.mrb[37].mxu1 }
 0x4fd   : > { %v1837_v62 = vmul.f32 %v4043_v5, %v1629_v51  ;;  %v2940_v10 = vpop.f32.mrb[38].mxu1  ;;  %2757 = vmatprep.subr.bf16.mxu1 %v1921_v21 }
 0x4fe   : > { %v1840_v23 = vmul.f32 %v2940_v10, %v4043_v5  ;;  %v1632_v45 = vpop.f32.mrb[39].mxu1  ;;  %2758 = vmatpush3.bf16.msra.mxu1 %v4067_v54  ;;  %v1903_v0 = vsub.f32 %v4163_v39, %v1839_v56  ;;  %v4207_v56 = vld [vmem:[%s3377_s13 + $0xf0] sm:$0xff]  ;;  %v4211_v10 = vld [vmem:[%s3377_s13 + $0xf8] sm:$0xff] }
 0x4ff   : > { %v1838_v8 = vmul.f32 %v4043_v5, %v1632_v45  ;;  %2759 = vmatprep.subr.bf16.mxu1 %v1922_v37  ;;  %v1901_v12 = vsub.f32 %v4170_v50, %v1837_v62 }
 0x500   : > { %v1904_v49 = vsub.f32 %v4167_v7, %v1840_v23  ;;  %v4214_v23 = vld [vmem:[%s3377_s13 + $0xe0] sm:$0xff] }
 0x501   : > { %v1902_v36 = vsub.f32 %v4174_v31, %v1838_v8 }
 0x502   : > { %2760 = vmatpush3.bf16.msra.mxu1 %v4065_v17  ;;  %v1924_v32 = vpack.c.bf16 %v1904_v49, %v1903_v0 }
 0x503   : > { %v2943_v41 = vpop.f32.mrb[40].mxu1  ;;  %v1923_v47 = vpack.c.bf16 %v1902_v36, %v1901_v12 }
 0x504   : > { %v1843_v54 = vmul.f32 %v2943_v41, %v4043_v5  ;;  %v1645_v30 = vpop.f32.mrb[41].mxu1 }
 0x505   : > { %v1841_v43 = vmul.f32 %v4043_v5, %v1645_v30  ;;  %v2944_v25 = vpop.f32.mrb[42].mxu1  ;;  %2761 = vmatprep.subr.bf16.mxu1 %v1923_v47  ;;  %v3093_v30 = vld [vmem:[%s4451_s3 + $0x30] ss:$8 sps:$4 sm:$0xff]  }
 0x506   : > { %v1844_v53 = vmul.f32 %v2944_v25, %v4043_v5  ;;  %v1648_v17 = vpop.f32.mrb[43].mxu1  ;;  %2762 = vmatpush3.bf16.msra.mxu1 %v4091_v13  ;;  %v1907_v28 = vsub.f32 %v4185_v55, %v1843_v54  ;;  %v3091_v54 = vld [vmem:[%s4451_s3 + $0x34] ss:$8 sps:$4 sm:$0xff]   ;;  %v3096_v25 = vld [vmem:[%s4451_s3 + $0x40] ss:$8 sps:$4 sm:$0xff]  }
 0x507   : > { %v1842_v59 = vmul.f32 %v4043_v5, %v1648_v17  ;;  %2763 = vmatprep.subr.bf16.mxu1 %v1924_v32  ;;  %v1905_v4 = vsub.f32 %v4192_v48, %v1841_v43  ;;  %v3094_v43 = vld [vmem:[%s4451_s3 + $0x44] ss:$8 sps:$4 sm:$0xff]   ;;  %v3099_v17 = vld [vmem:[%s4451_s3 + $0x50] ss:$8 sps:$4 sm:$0xff]  }
 0x508   : > { %v1908_v22 = vsub.f32 %v4189_v58, %v1844_v53  ;;  %v3097_v53 = vld [vmem:[%s4451_s3 + $0x54] ss:$8 sps:$4 sm:$0xff]  }
 0x509   : > { %v1906_v9 = vsub.f32 %v4196_v6, %v1842_v59  ;;  %v3100_v59 = vld [vmem:[%s4451_s3 + $0x64] ss:$8 sps:$4 sm:$0xff]  }
 0x50a   : > { %2764 = vmatpush3.bf16.msra.mxu1 %v4089_v42  ;;  %v1926_v15 = vpack.c.bf16 %v1908_v22, %v1907_v28  ;;  %v4218_v42 = vld [vmem:[%s3377_s13 + $0xe8] sm:$0xff]  ;;  %v3103_v22 = vld [vmem:[%s4451_s3 + $0x74] ss:$8 sps:$4 sm:$0xff]  }
 0x50b   : > { %v2947_v37 = vpop.f32.mrb[44].mxu1  ;;  %v1925_v19 = vpack.c.bf16 %v1906_v9, %v1905_v4  ;;  %v3102_v28 = vld [vmem:[%s4451_s3 + $0x60] ss:$8 sps:$4 sm:$0xff]   ;;  %v3105_v4 = vld [vmem:[%s4451_s3 + $0x70] ss:$8 sps:$4 sm:$0xff]  }
 0x50c   : > { %v1847_v13 = vmul.f32 %v2947_v37, %v4043_v5  ;;  %v1661_v21 = vpop.f32.mrb[45].mxu1  ;;  %v3106_v9 = vld [vmem:[%s4451_s3 + $0x84] ss:$8 sps:$4 sm:$0xff]   ;;  %v3109_v37 = vld [vmem:[%s4451_s3 + $0x94] ss:$8 sps:$4 sm:$0xff]  }
 0x50d   : > { %v1845_v51 = vmul.f32 %v4043_v5, %v1661_v21  ;;  %v2948_v62 = vpop.f32.mrb[46].mxu1  ;;  %2765 = vmatprep.subr.bf16.mxu1 %v1925_v19  ;;  %v3111_v19 = vld [vmem:[%s4451_s3 + $0x90] ss:$8 sps:$4 sm:$0xff]   ;;  %v3114_v21 = vld [vmem:[%s4451_s3 + $0xa0] ss:$8 sps:$4 sm:$0xff]  }
 0x50e   : > { %v1848_v45 = vmul.f32 %v2948_v62, %v4043_v5  ;;  %v1664_v8 = vpop.f32.mrb[47].mxu1  ;;  %2766 = vmatpush3.bf16.msra.mxu1 %v4115_v20  ;;  %v1911_v49 = vsub.f32 %v4207_v56, %v1847_v13  ;;  %v3085_v20 = vld [vmem:[%s4451_s3 + $0x14] ss:$8 sps:$4 sm:$0xff]   ;;  %v3112_v13 = vld [vmem:[%s4451_s3 + $0xa4] ss:$8 sps:$4 sm:$0xff]  }
 0x50f   : > { %v1846_v0 = vmul.f32 %v4043_v5, %v1664_v8  ;;  %2767 = vmatprep.subr.bf16.mxu1 %v1926_v15  ;;  %v1909_v36 = vsub.f32 %v4214_v23, %v1845_v51  ;;  %v3082_v5 = vld [vmem:[%s4451_s3] ss:$8 sps:$4 sm:$0xff]   ;;  %v3115_v51 = vld [vmem:[%s4451_s3 + $0xb4] ss:$8 sps:$4 sm:$0xff]   ;;  %v3117_v62 = vld [vmem:[%s4451_s3 + $0xb0] ss:$8 sps:$4 sm:$0xff]  }
 0x510   : > { %v1912_v12 = vsub.f32 %v4211_v10, %v1848_v45  ;;  %v3108_v15 = vld [vmem:[%s4451_s3 + $0x80] ss:$8 sps:$4 sm:$0xff]   ;;  %v3118_v45 = vld [vmem:[%s4451_s3 + $0xc4] ss:$8 sps:$4 sm:$0xff]  }
 0x511   : > { %v1910_v32 = vsub.f32 %v4218_v42, %v1846_v0  ;;  %v3120_v8 = vld [vmem:[%s4451_s3 + $0xc0] ss:$8 sps:$4 sm:$0xff]   ;;  %v3121_v0 = vld [vmem:[%s4451_s3 + $0xd4] ss:$8 sps:$4 sm:$0xff]  }
 0x512   : > { %2768 = vmatpush3.bf16.msra.mxu1 %v4113_v29  ;;  %v1928_v41 = vpack.c.bf16 %v1912_v12, %v1911_v49  ;;  %v3087_v29 = vld [vmem:[%s4451_s3 + $0x10] ss:$8 sps:$4 sm:$0xff]   ;;  %v3124_v12 = vld [vmem:[%s4451_s3 + $0xe4] ss:$8 sps:$4 sm:$0xff]  }
 0x513   : > { %v1927_v47 = vpack.c.bf16 %v1910_v32, %v1909_v36  ;;  %v3123_v49 = vld [vmem:[%s4451_s3 + $0xd0] ss:$8 sps:$4 sm:$0xff]   ;;  %v3126_v36 = vld [vmem:[%s4451_s3 + $0xe0] ss:$8 sps:$4 sm:$0xff]   ;;  %v3127_v32 = vld [vmem:[%s4451_s3 + $0xf4] ss:$8 sps:$4 sm:$0xff]  }
 0x515   : > { %2769 = vmatprep.subr.bf16.mxu1 %v1927_v47 }
 0x516   : > { %2770 = vmatpush3.bf16.msra.mxu1 %v4139_v3  ;;  %v3088_v3 = vld [vmem:[%s4451_s3 + $0x24] ss:$8 sps:$4 sm:$0xff]  }
 0x517   : > { %2771 = vmatprep.subr.bf16.mxu1 %v1928_v41  ;;  %v3129_v41 = vld [vmem:[%s4451_s3 + $0xf0] ss:$8 sps:$4 sm:$0xff]  }
 0x51a   : > { %2772 = vmatpush3.bf16.msra.mxu1 %v4137_v40  ;;  %v3090_v40 = vld [vmem:[%s4451_s3 + $0x20] ss:$8 sps:$4 sm:$0xff]  }
 0x51d   : > { %2314 = vmatmul.mubr.bf16.vlgmr.msra.gmra.mrb[48].mxu1 %v3082_v5 }
 0x51e   : > { %2321 = vmatprep.mubr.bf16.mxu1 %v3085_v20 }
 0x525   : > { %2322 = vmatmul.mubr.bf16.gmra.mrb[52].mxu1 %v3087_v29 }
 0x526   : > { %2329 = vmatprep.mubr.bf16.mxu1 %v3088_v3  ;;  %v1964_v3 = vpop.permute.xlu0 %1963 }
 0x52d   : > { %2330 = vmatmul.mubr.bf16.gmra.mrb[56].mxu1 %v3090_v40 }
 0x52e   : > { %2337 = vmatprep.mubr.bf16.mxu1 %v3091_v54 }
 0x535   : > { %2338 = vmatmul.mubr.bf16.gmra.mrb[60].mxu1 %v3093_v30 }
 0x536   : > { %2345 = vmatprep.mubr.bf16.mxu1 %v3094_v43  ;;  %v1969_v43 = vpop.permute.xlu1 %1968 }
 0x53d   : > { %2346 = vmatmul.mubr.bf16.gmra.mrb[64].mxu1 %v3096_v25 }
 0x53e   : > { %2353 = vmatprep.mubr.bf16.mxu1 %v3097_v53 }
 0x545   : > { %2354 = vmatmul.mubr.bf16.gmra.mrb[68].mxu1 %v3099_v17 }
 0x546   : > { %2361 = vmatprep.mubr.bf16.mxu1 %v3100_v59 }
 0x54d   : > { %2362 = vmatmul.mubr.bf16.gmra.mrb[72].mxu1 %v3102_v28 }
 0x54e   : > { %2369 = vmatprep.mubr.bf16.mxu1 %v3103_v22 }
 0x555   : > { %2370 = vmatmul.mubr.bf16.gmra.mrb[76].mxu1 %v3105_v4 }
 0x556   : > { %2377 = vmatprep.mubr.bf16.mxu1 %v3106_v9 }
 0x55d   : > { %2378 = vmatmul.mubr.bf16.gmra.mrb[80].mxu1 %v3108_v15 }
 0x55e   : > { %2385 = vmatprep.mubr.bf16.mxu1 %v3109_v37  ;;  %v1974_v37 = vpop.permute.xlu0 %1973 }
 0x565   : > { %2386 = vmatmul.mubr.bf16.gmra.mrb[84].mxu1 %v3111_v19 }
 0x566   : > { %2393 = vmatprep.mubr.bf16.mxu1 %v3112_v13 }
 0x56d   : > { %2394 = vmatmul.mubr.bf16.gmra.mrb[88].mxu1 %v3114_v21 }
 0x56e   : > { %2401 = vmatprep.mubr.bf16.mxu1 %v3115_v51 }
 0x575   : > { %2402 = vmatmul.mubr.bf16.gmra.mrb[92].mxu1 %v3117_v62 }
 0x576   : > { %2409 = vmatprep.mubr.bf16.mxu1 %v3118_v45 }
 0x57d   : > { %2410 = vmatmul.mubr.bf16.gmra.mrb[96].mxu1 %v3120_v8 }
 0x57e   : > { %2417 = vmatprep.mubr.bf16.mxu1 %v3121_v0 }
 0x585   : > { %2418 = vmatmul.mubr.bf16.gmra.mrb[100].mxu1 %v3123_v49 }
 0x586   : > { %2425 = vmatprep.mubr.bf16.mxu1 %v3124_v12 }
 0x58d   : > { %2426 = vmatmul.mubr.bf16.gmra.mrb[104].mxu1 %v3126_v36 }
 0x58e   : > { %2433 = vmatprep.mubr.bf16.mxu1 %v3127_v32  ;;  %v1984_v32 = vpop.permute.xlu0 %1983 }
 0x595   : > { %2434 = vmatmul.mubr.bf16.gmra.mrb[108].mxu1 %v3129_v41 }
 0x5f0   : > { %v2773_v47 = vpop.f32.mrb[48].mxu1 }
 0x5f1   : > { %v2774_v5 = vpop.f32.mrb[49].mxu1 }
 0x5f2   : > { %v2775_v20 = vadd.f32 %v2774_v5, %v2773_v47  ;;  %v2776_v29 = vpop.f32.mrb[50].mxu1 }
 0x5f3   : > { %v2777_v40 = vpop.f32.mrb[51].mxu1 }
 0x5f4   : > { %v2316_v54 = vadd.f32 %v2775_v20, %v1964_v3  ;;  %v2778_v30 = vadd.f32 %v2777_v40, %v2776_v29 }
 0x5f6   : > { %v2442_v25 = vmax.f32 %v2316_v54, 0.0  ;;  %v2319_v53 = vadd.f32 %v2778_v30, %v1969_v43 }
 0x5f8   : > { %v2474_v17 = vadd.f32 %v2442_v25, %v4054_v27  ;;  %v2443_v59 = vmax.f32 %v2319_v53, 0.0  ;;  %v2779_v28 = vpop.f32.mrb[52].mxu1  ;;  %v1979_v27 = vpop.permute.xlu1 %1978 }
 0x5f9   : > { %v2780_v22 = vpop.f32.mrb[53].mxu1  ;;  %v1994_v53 = vpop.permute.xlu0 %1993 }
 0x5fa   : > { %2506 = vst [vmem:[%s4326_s29] sm:$0xff] %v2474_v17  ;;  %v2475_v4 = vadd.f32 %v2443_v59, %v4058_v57  ;;  %v2781_v9 = vadd.f32 %v2780_v22, %v2779_v28  ;;  %v2782_v15 = vpop.f32.mrb[54].mxu1 }
 0x5fb   : > { %v2783_v19 = vpop.f32.mrb[55].mxu1 }
 0x5fc   : > { %2507 = vst [vmem:[%s4326_s29 + $0x8] sm:$0xff] %v2475_v4  ;;  %v2324_v13 = vadd.f32 %v2781_v9, %v1974_v37  ;;  %v2784_v21 = vadd.f32 %v2783_v19, %v2782_v15  ;;  %v1989_v20 = vpop.permute.xlu1 %1988 }
 0x5fe   : > { %v2444_v51 = vmax.f32 %v2324_v13, 0.0  ;;  %v2327_v62 = vadd.f32 %v2784_v21, %v1979_v27  ;;  %v2004_v27 = vpop.permute.xlu0 %2003 }
 0x600   : > { %v2476_v45 = vadd.f32 %v2444_v51, %v4047_v46  ;;  %v2445_v8 = vmax.f32 %v2327_v62, 0.0  ;;  %v2785_v0 = vpop.f32.mrb[56].mxu1  ;;  %v1999_v22 = vpop.permute.xlu1 %1998 }
 0x601   : > { %v2786_v49 = vpop.f32.mrb[57].mxu1 }
 0x602   : > { %2508 = vst [vmem:[%s4326_s29 + $0x10] sm:$0xff] %v2476_v45  ;;  %v2477_v57 = vadd.f32 %v2445_v8, %v4051_v38  ;;  %v2787_v12 = vadd.f32 %v2786_v49, %v2785_v0  ;;  %v2788_v36 = vpop.f32.mrb[58].mxu1 }
 0x603   : > { %v2789_v41 = vpop.f32.mrb[59].mxu1 }
 0x604   : > { %2509 = vst [vmem:[%s4326_s29 + $0x18] sm:$0xff] %v2477_v57  ;;  %v2332_v47 = vadd.f32 %v2787_v12, %v1984_v32  ;;  %v2790_v5 = vadd.f32 %v2789_v41, %v2788_v36  ;;  %v2009_v8 = vpop.permute.xlu1 %2008 }
 0x606   : > { %v2446_v29 = vmax.f32 %v2332_v47, 0.0  ;;  %v2335_v3 = vadd.f32 %v2790_v5, %v1989_v20  ;;  %v2014_v47 = vpop.permute.xlu0 %2013 }
 0x608   : > { %v2478_v46 = vadd.f32 %v2446_v29, %v4078_v11  ;;  %v2447_v40 = vmax.f32 %v2335_v3, 0.0  ;;  %v2791_v54 = vpop.f32.mrb[60].mxu1  ;;  %v2019_v3 = vpop.permute.xlu1 %2018 }
 0x609   : > { %v2792_v30 = vpop.f32.mrb[61].mxu1 }
 0x60a   : > { %2510 = vst [vmem:[%s4326_s29 + $0x20] sm:$0xff] %v2478_v46  ;;  %v2479_v38 = vadd.f32 %v2447_v40, %v4082_v1  ;;  %v2793_v43 = vadd.f32 %v2792_v30, %v2791_v54  ;;  %v2794_v25 = vpop.f32.mrb[62].mxu1 }
 0x60b   : > { %v2795_v17 = vpop.f32.mrb[63].mxu1 }
 0x60c   : > { %2511 = vst [vmem:[%s4326_s29 + $0x28] sm:$0xff] %v2479_v38  ;;  %v2340_v59 = vadd.f32 %v2793_v43, %v1994_v53  ;;  %v2796_v28 = vadd.f32 %v2795_v17, %v2794_v25  ;;  %v2024_v53 = vpop.permute.xlu0 %2023 }
 0x60e   : > { %v2448_v4 = vmax.f32 %v2340_v59, 0.0  ;;  %v2343_v9 = vadd.f32 %v2796_v28, %v1999_v22  ;;  %v2029_v22 = vpop.permute.xlu1 %2028 }
 0x610   : > { %v2480_v11 = vadd.f32 %v2448_v4, %v4071_v61  ;;  %v2449_v15 = vmax.f32 %v2343_v9, 0.0  ;;  %v2797_v37 = vpop.f32.mrb[64].mxu1 }
 0x611   : > { %v2798_v19 = vpop.f32.mrb[65].mxu1 }
 0x612   : > { %2512 = vst [vmem:[%s4326_s29 + $0x30] sm:$0xff] %v2480_v11  ;;  %v2481_v1 = vadd.f32 %v2449_v15, %v4075_v14  ;;  %v2799_v13 = vadd.f32 %v2798_v19, %v2797_v37  ;;  %v2800_v21 = vpop.f32.mrb[66].mxu1 }
 0x613   : > { %v2801_v51 = vpop.f32.mrb[67].mxu1 }
 0x614   : > { %2513 = vst [vmem:[%s4326_s29 + $0x38] sm:$0xff] %v2481_v1  ;;  %v2348_v62 = vadd.f32 %v2799_v13, %v2004_v27  ;;  %v2802_v45 = vadd.f32 %v2801_v51, %v2800_v21  ;;  %v2034_v13 = vpop.permute.xlu0 %2033 }
 0x616   : > { %v2450_v0 = vmax.f32 %v2348_v62, 0.0  ;;  %v2351_v49 = vadd.f32 %v2802_v45, %v2009_v8  ;;  %v2039_v62 = vpop.permute.xlu1 %2038 }
 0x618   : > { %v2482_v61 = vadd.f32 %v2450_v0, %v4102_v16  ;;  %v2451_v57 = vmax.f32 %v2351_v49, 0.0  ;;  %v2803_v12 = vpop.f32.mrb[68].mxu1 }
 0x619   : > { %v2804_v36 = vpop.f32.mrb[69].mxu1 }
 0x61a   : > { %2514 = vst [vmem:[%s4326_s29 + $0x40] sm:$0xff] %v2482_v61  ;;  %v2483_v14 = vadd.f32 %v2451_v57, %v4106_v35  ;;  %v2805_v32 = vadd.f32 %v2804_v36, %v2803_v12  ;;  %v2806_v41 = vpop.f32.mrb[70].mxu1  ;;  %v2044_v36 = vpop.permute.xlu0 %2043 }
 0x61b   : > { %v2807_v5 = vpop.f32.mrb[71].mxu1 }
 0x61c   : > { %2515 = vst [vmem:[%s4326_s29 + $0x48] sm:$0xff] %v2483_v14  ;;  %v2356_v20 = vadd.f32 %v2805_v32, %v2014_v47  ;;  %v2808_v29 = vadd.f32 %v2807_v5, %v2806_v41  ;;  %v2049_v47 = vpop.permute.xlu1 %2048 }
 0x61e   : > { %v2452_v46 = vmax.f32 %v2356_v20, 0.0  ;;  %v2359_v40 = vadd.f32 %v2808_v29, %v2019_v3 }
 0x620   : > { %v2484_v16 = vadd.f32 %v2452_v46, %v4095_v33  ;;  %v2453_v54 = vmax.f32 %v2359_v40, 0.0  ;;  %v2809_v30 = vpop.f32.mrb[72].mxu1 }
 0x621   : > { %v2810_v38 = vpop.f32.mrb[73].mxu1 }
 0x622   : > { %2516 = vst [vmem:[%s4326_s29 + $0x50] sm:$0xff] %v2484_v16  ;;  %v2485_v35 = vadd.f32 %v2453_v54, %v4099_v18  ;;  %v2811_v43 = vadd.f32 %v2810_v38, %v2809_v30  ;;  %v2812_v25 = vpop.f32.mrb[74].mxu1  ;;  %v2054_v54 = vpop.permute.xlu0 %2053 }
 0x623   : > { %v2813_v17 = vpop.f32.mrb[75].mxu1 }
 0x624   : > { %2517 = vst [vmem:[%s4326_s29 + $0x58] sm:$0xff] %v2485_v35  ;;  %v2364_v59 = vadd.f32 %v2811_v43, %v2024_v53  ;;  %v2814_v28 = vadd.f32 %v2813_v17, %v2812_v25  ;;  %v2059_v43 = vpop.permute.xlu1 %2058 }
 0x626   : > { %v2454_v4 = vmax.f32 %v2364_v59, 0.0  ;;  %v2367_v9 = vadd.f32 %v2814_v28, %v2029_v22 }
 0x628   : > { %v2486_v33 = vadd.f32 %v2454_v4, %v4126_v60  ;;  %v2455_v11 = vmax.f32 %v2367_v9, 0.0  ;;  %v2815_v15 = vpop.f32.mrb[76].mxu1  ;;  %v2064_v9 = vpop.permute.xlu0 %2063 }
 0x629   : > { %v2816_v37 = vpop.f32.mrb[77].mxu1 }
 0x62a   : > { %2518 = vst [vmem:[%s4326_s29 + $0x60] sm:$0xff] %v2486_v33  ;;  %v2487_v18 = vadd.f32 %v2455_v11, %v4130_v24  ;;  %v2817_v19 = vadd.f32 %v2816_v37, %v2815_v15  ;;  %v2818_v1 = vpop.f32.mrb[78].mxu1  ;;  %v2069_v37 = vpop.permute.xlu1 %2068 }
 0x62b   : > { %v2819_v21 = vpop.f32.mrb[79].mxu1 }
 0x62c   : > { %2519 = vst [vmem:[%s4326_s29 + $0x68] sm:$0xff] %v2487_v18  ;;  %v2372_v27 = vadd.f32 %v2817_v19, %v2034_v13  ;;  %v2820_v51 = vadd.f32 %v2819_v21, %v2818_v1 }
 0x62e   : > { %v2456_v45 = vmax.f32 %v2372_v27, 0.0  ;;  %v2375_v8 = vadd.f32 %v2820_v51, %v2039_v62  ;;  %v2074_v62 = vpop.permute.xlu0 %2073 }
 0x630   : > { %v2488_v60 = vadd.f32 %v2456_v45, %v4119_v34  ;;  %v2457_v0 = vmax.f32 %v2375_v8, 0.0  ;;  %v2821_v49 = vpop.f32.mrb[80].mxu1 }
 0x631   : > { %v2822_v61 = vpop.f32.mrb[81].mxu1 }
 0x632   : > { %2520 = vst [vmem:[%s4326_s29 + $0x70] sm:$0xff] %v2488_v60  ;;  %v2489_v24 = vadd.f32 %v2457_v0, %v4123_v63  ;;  %v2823_v57 = vadd.f32 %v2822_v61, %v2821_v49  ;;  %v2824_v12 = vpop.f32.mrb[82].mxu1  ;;  %v2079_v0 = vpop.permute.xlu1 %2078 }
 0x633   : > { %v2825_v14 = vpop.f32.mrb[83].mxu1 }
 0x634   : > { %2521 = vst [vmem:[%s4326_s29 + $0x78] sm:$0xff] %v2489_v24  ;;  %v2380_v32 = vadd.f32 %v2823_v57, %v2044_v36  ;;  %v2826_v41 = vadd.f32 %v2825_v14, %v2824_v12 }
 0x636   : > { %v2458_v5 = vmax.f32 %v2380_v32, 0.0  ;;  %v2383_v20 = vadd.f32 %v2826_v41, %v2049_v47  ;;  %v2084_v32 = vpop.permute.xlu0 %2083 }
 0x638   : > { %v2490_v34 = vadd.f32 %v2458_v5, %v4150_v2  ;;  %v2459_v29 = vmax.f32 %v2383_v20, 0.0  ;;  %v2827_v3 = vpop.f32.mrb[84].mxu1  ;;  %v2089_v20 = vpop.permute.xlu1 %2088 }
 0x639   : > { %v2828_v46 = vpop.f32.mrb[85].mxu1 }
 0x63a   : > { %2522 = vst [vmem:[%s4326_s29 + $0x80] sm:$0xff] %v2490_v34  ;;  %v2491_v63 = vadd.f32 %v2459_v29, %v4154_v26  ;;  %v2829_v40 = vadd.f32 %v2828_v46, %v2827_v3  ;;  %v2830_v16 = vpop.f32.mrb[86].mxu1 }
 0x63b   : > { %v2831_v30 = vpop.f32.mrb[87].mxu1 }
 0x63c   : > { %2523 = vst [vmem:[%s4326_s29 + $0x88] sm:$0xff] %v2491_v63  ;;  %v2388_v38 = vadd.f32 %v2829_v40, %v2054_v54  ;;  %v2832_v35 = vadd.f32 %v2831_v30, %v2830_v16  ;;  %v2094_v54 = vpop.permute.xlu0 %2093 }
 0x63e   : > { %v2460_v25 = vmax.f32 %v2388_v38, 0.0  ;;  %v2391_v53 = vadd.f32 %v2832_v35, %v2059_v43  ;;  %v2099_v43 = vpop.permute.xlu1 %2098 }
 0x640   : > { %v2492_v2 = vadd.f32 %v2460_v25, %v4143_v44  ;;  %v2461_v17 = vmax.f32 %v2391_v53, 0.0  ;;  %v2833_v59 = vpop.f32.mrb[88].mxu1 }
 0x641   : > { %v2834_v28 = vpop.f32.mrb[89].mxu1 }
 0x642   : > { %2524 = vst [vmem:[%s4326_s29 + $0x90] sm:$0xff] %v2492_v2  ;;  %v2493_v26 = vadd.f32 %v2461_v17, %v4147_v52  ;;  %v2835_v22 = vadd.f32 %v2834_v28, %v2833_v59  ;;  %v2836_v4 = vpop.f32.mrb[90].mxu1 }
 0x643   : > { %v2837_v33 = vpop.f32.mrb[91].mxu1 }
 0x644   : > { %2525 = vst [vmem:[%s4326_s29 + $0x98] sm:$0xff] %v2493_v26  ;;  %v2396_v11 = vadd.f32 %v2835_v22, %v2064_v9  ;;  %v2838_v15 = vadd.f32 %v2837_v33, %v2836_v4  ;;  %v2104_v22 = vpop.permute.xlu0 %2103 }
 0x646   : > { %v2462_v18 = vmax.f32 %v2396_v11, 0.0  ;;  %v2399_v19 = vadd.f32 %v2838_v15, %v2069_v37  ;;  %v2109_v11 = vpop.permute.xlu1 %2108 }
 0x648   : > { %v2494_v44 = vadd.f32 %v2462_v18, %v4170_v50  ;;  %v2463_v1 = vmax.f32 %v2399_v19, 0.0  ;;  %v2839_v13 = vpop.f32.mrb[92].mxu1 }
 0x649   : > { %v2840_v21 = vpop.f32.mrb[93].mxu1 }
 0x64a   : > { %2526 = vst [vmem:[%s4326_s29 + $0xa0] sm:$0xff] %v2494_v44  ;;  %v2495_v52 = vadd.f32 %v2463_v1, %v4174_v31  ;;  %v2841_v27 = vadd.f32 %v2840_v21, %v2839_v13  ;;  %v2842_v51 = vpop.f32.mrb[94].mxu1  ;;  %v2114_v21 = vpop.permute.xlu0 %2113 }
 0x64b   : > { %v2843_v45 = vpop.f32.mrb[95].mxu1 }
 0x64c   : > { %2527 = vst [vmem:[%s4326_s29 + $0xa8] sm:$0xff] %v2495_v52  ;;  %v2404_v8 = vadd.f32 %v2841_v27, %v2074_v62  ;;  %v2844_v60 = vadd.f32 %v2843_v45, %v2842_v51 }
 0x64e   : > { %v2464_v49 = vmax.f32 %v2404_v8, 0.0  ;;  %v2407_v61 = vadd.f32 %v2844_v60, %v2079_v0 }
 0x650   : > { %v2496_v50 = vadd.f32 %v2464_v49, %v4163_v39  ;;  %v2465_v24 = vmax.f32 %v2407_v61, 0.0  ;;  %v2845_v57 = vpop.f32.mrb[96].mxu1 }
 0x651   : > { %v2846_v12 = vpop.f32.mrb[97].mxu1 }
 0x652   : > { %2528 = vst [vmem:[%s4326_s29 + $0xb0] sm:$0xff] %v2496_v50  ;;  %v2497_v31 = vadd.f32 %v2465_v24, %v4167_v7  ;;  %v2847_v36 = vadd.f32 %v2846_v12, %v2845_v57  ;;  %v2848_v14 = vpop.f32.mrb[98].mxu1 }
 0x653   : > { %v2849_v41 = vpop.f32.mrb[99].mxu1 }
 0x654   : > { %2529 = vst [vmem:[%s4326_s29 + $0xb8] sm:$0xff] %v2497_v31  ;;  %v2412_v47 = vadd.f32 %v2847_v36, %v2084_v32  ;;  %v2850_v5 = vadd.f32 %v2849_v41, %v2848_v14 }
 0x656   : > { %v2466_v34 = vmax.f32 %v2412_v47, 0.0  ;;  %v2415_v29 = vadd.f32 %v2850_v5, %v2089_v20 }
 0x658   : > { %v2498_v39 = vadd.f32 %v2466_v34, %v4192_v48  ;;  %v2467_v3 = vmax.f32 %v2415_v29, 0.0  ;;  %v2851_v46 = vpop.f32.mrb[100].mxu1 }
 0x659   : > { %v2852_v63 = vpop.f32.mrb[101].mxu1 }
 0x65a   : > { %2530 = vst [vmem:[%s4326_s29 + $0xc0] sm:$0xff] %v2498_v39  ;;  %v2499_v7 = vadd.f32 %v2467_v3, %v4196_v6  ;;  %v2853_v40 = vadd.f32 %v2852_v63, %v2851_v46  ;;  %v2854_v16 = vpop.f32.mrb[102].mxu1 }
 0x65b   : > { %v2855_v30 = vpop.f32.mrb[103].mxu1 }
 0x65c   : > { %2531 = vst [vmem:[%s4326_s29 + $0xc8] sm:$0xff] %v2499_v7  ;;  %v2420_v38 = vadd.f32 %v2853_v40, %v2094_v54  ;;  %v2856_v35 = vadd.f32 %v2855_v30, %v2854_v16 }
 0x65e   : > { %v2468_v25 = vmax.f32 %v2420_v38, 0.0  ;;  %v2423_v53 = vadd.f32 %v2856_v35, %v2099_v43 }
 0x660   : > { %v2500_v48 = vadd.f32 %v2468_v25, %v4185_v55  ;;  %v2469_v2 = vmax.f32 %v2423_v53, 0.0  ;;  %v2857_v17 = vpop.f32.mrb[104].mxu1 }
 0x661   : > { %v2858_v59 = vpop.f32.mrb[105].mxu1 }
 0x662   : > { %2532 = vst [vmem:[%s4326_s29 + $0xd0] sm:$0xff] %v2500_v48  ;;  %v2501_v6 = vadd.f32 %v2469_v2, %v4189_v58  ;;  %v2859_v28 = vadd.f32 %v2858_v59, %v2857_v17  ;;  %v2860_v26 = vpop.f32.mrb[106].mxu1 }
 0x663   : > { %v2861_v4 = vpop.f32.mrb[107].mxu1 }
 0x664   : > { %2533 = vst [vmem:[%s4326_s29 + $0xd8] sm:$0xff] %v2501_v6  ;;  %v2428_v9 = vadd.f32 %v2859_v28, %v2104_v22  ;;  %v2862_v33 = vadd.f32 %v2861_v4, %v2860_v26 }
 0x666   : > { %v2470_v15 = vmax.f32 %v2428_v9, 0.0  ;;  %v2431_v37 = vadd.f32 %v2862_v33, %v2109_v11 }
 0x668   : > { %v2502_v55 = vadd.f32 %v2470_v15, %v4214_v23  ;;  %v2471_v18 = vmax.f32 %v2431_v37, 0.0  ;;  %v2863_v19 = vpop.f32.mrb[108].mxu1  ;;  %v2119_v23 = vpop.permute.xlu1 %2118 }
 0x669   : > { %v2864_v44 = vpop.f32.mrb[109].mxu1 }
 0x66a   : > { %2534 = vst [vmem:[%s4326_s29 + $0xe0] sm:$0xff] %v2502_v55  ;;  %v2503_v58 = vadd.f32 %v2471_v18, %v4218_v42  ;;  %v2865_v1 = vadd.f32 %v2864_v44, %v2863_v19  ;;  %v2866_v13 = vpop.f32.mrb[110].mxu1 }
 0x66b   : > { %v2867_v52 = vpop.f32.mrb[111].mxu1 }
 0x66c   : > { %2535 = vst [vmem:[%s4326_s29 + $0xe8] sm:$0xff] %v2503_v58  ;;  %v2436_v27 = vadd.f32 %v2865_v1, %v2114_v21  ;;  %v2868_v51 = vadd.f32 %v2867_v52, %v2866_v13 }
 0x66e   : > { %v2472_v62 = vmax.f32 %v2436_v27, 0.0  ;;  %v2439_v45 = vadd.f32 %v2868_v51, %v2119_v23 }
 0x670   : > { %v2504_v8 = vadd.f32 %v2472_v62, %v4207_v56  ;;  %v2473_v60 = vmax.f32 %v2439_v45, 0.0 }
 0x672   : > { %2536 = vst [vmem:[%s4326_s29 + $0xf0] sm:$0xff] %v2504_v8  ;;  %v2505_v42 = vadd.f32 %v2473_v60, %v4211_v10 }
 0x674   : > { %2537 = vst [vmem:[%s4326_s29 + $0xf8] sm:$0xff] %v2505_v42 }
 0x675   : > { %3209 = shalt.err (!%p3206_p5)
}
 0x676   : > { %s3210_s17 = scalar_lea.hbm %s4393_s11, 4096  ;;  %s3214_s25 = scalar_lea.hbm %s4453_s5, 8192 }
 0x677   : > { %p3211_p6 = scmp.ne.s32.totalorder %s4393_s11, %s3210_s17  ;;  %p3215_p10 = scmp.lt.u32.totalorder %s4393_s11, %s4453_s5 }
 0x678   : > { %p3216_p11 = scmp.lt.u32.totalorder %s3214_s25, %s3210_s17  ;;  %p3218_p13 = scmp.lt.u32.totalorder %s3210_s17, %s4393_s11 }
 0x679   : > { %p3212_p7 = pnand %p3211_p6, %p3351_p4 }
 0x67a   : > { %p3217_p12 = por %p3216_p11, %p3215_p10 }
 0x67b   : > { %p3213_p9 = pneg %p3212_p7 }
 0x67c   : > { %p3219_p0 = por %p3218_p13, %p3217_p12 }
 0x67e   : > { %p3220_p1 = pnand %p3219_p0, %p3213_p9 }
 0x680   : > { %3223 = shalt.err (!%p3220_p1)
}
 0x681   : > { %s3279_s7 = smov 128   ;;  %s3280_s9 = smov 8  }
 0x682   : > { %2949 = dma.vmem_to_hbm [thread:$0]  (%p3351_p4), %s4395_s8, 4096, %s4393_s11, %s4402_s21, %s3279_s7, %s3279_s7, %s3280_s9  }
 0x683 PF: > { %p2955_p2 = scmp.ge.s32.totalorder %s3274_s23, 2  ;;  %s2567_s10 = sand.u32 1, %s3254_s18  }
 0x684   : > { %s2568_s12 = scalar_lea.sflag [#allocation6], %s2567_s10 }
 0x685   : > { %p2952_p3 = pnand %p2955_p2, %p3358_p8 }
 0x687   : > { %3249 = dma.done.wait (!%p2952_p3), %s2568_s12, 4096  }
 0x688   : > { %3251 = vsyncadd (!%p2952_p3), %s2568_s12, 4294963200  ;;  %s18_s23 = sadd.s32 1, %s3274_s23   ;;  %s4456_s18 = smov %s3258_s19 }
 0x689   : > { %p15_p5 = scmp.ge.s32.totalorder %s18_s23, 4   ;;  %s4457_s19 = smov %s3262_s20 }
 0x68a   : > { %s4458_s20 = smov %s3364_s6  ;;  %s4459_s21 = smov %s3270_s22 }
 0x68b   : > { %s4460_s22 = smov %s4462_s26  ;;  %17 = sbr.rel (!%p15_p5) target bundleno = 4 (0x4), region = 83 }
 0x692   :  { %2573 = vsyncpa [#allocation6], 1 }
 0x693   :  { %2575 = vsyncpa [#allocation6 + $0x1], 1 }

</bundles_post_ra>
